<compile_context>
chip_gen: v7x
topology: tpu7x:2x2x1
jax: 0.10.0
libtpu: 0.0.40
codegen_flags: <defaults>
</compile_context>

<pallas_src>
import math

import jax
import jax.numpy as jnp
import numpy as np
from jax import lax
from jax.experimental import pallas as pl
from jax.experimental.pallas import tpu as pltpu


# ----------------------------------------------------------------------------
# ALiBi-style slope tensor (same as _build_slope_tensor in the PyTorch module)
# ----------------------------------------------------------------------------
def _build_slope_tensor(n_heads: int) -> jnp.ndarray:
    def get_slopes_power_of_2(n):
        start = 2.0 ** (-(2.0 ** -(math.log2(n) - 3)))
        return [start * (start ** i) for i in range(n)]

    def get_slopes(n):
        if math.log2(n).is_integer():
            return get_slopes_power_of_2(n)
        closest = 2 ** math.floor(math.log2(n))
        return (get_slopes_power_of_2(closest)
                + get_slopes(2 * closest)[0::2][: n - closest])

    return jnp.asarray(get_slopes(n_heads), dtype=jnp.float32)


# ----------------------------------------------------------------------------
# Kernel 1: fused q/k/v projection + SiLU, written directly in (B,H,N,D) layout.
#   grid (B, N-tile, H); per-head fused weight slab (E, 3D) -> one MXU matmul,
#   then lane-sliced into q/k/v.
# ----------------------------------------------------------------------------
def _qkv_silu_kernel(x_ref, wqkv_ref, q_ref, k_ref, v_ref):
    x = x_ref[...]                                                     # (Tn, E) bf16
    y = jnp.dot(x, wqkv_ref[...], preferred_element_type=jnp.float32)  # (Tn, 3D) f32
    y = y * jax.nn.sigmoid(y)                                          # SiLU
    D = q_ref.shape[-1]
    q_ref[...] = y[:, :D].astype(q_ref.dtype)
    k_ref[...] = y[:, D:2 * D].astype(k_ref.dtype)
    v_ref[...] = y[:, 2 * D:3 * D].astype(v_ref.dtype)


def qkv_silu_heads(x, wqkv_h, *, seq_tile):
    B, Np, E = x.shape
    H, _, D3 = wqkv_h.shape
    D = D3 // 3
    Tn = seq_tile
    NT = Np // Tn
    x_spec = pl.BlockSpec((None, Tn, E), lambda b, n, h: (b, n, 0))
    w_spec = pl.BlockSpec((None, E, D3), lambda b, n, h: (h, 0, 0))
    o_spec = pl.BlockSpec((None, None, Tn, D), lambda b, n, h: (b, h, n, 0))
    out = jax.ShapeDtypeStruct((B, H, Np, D), jnp.bfloat16)
    return pl.pallas_call(
        _qkv_silu_kernel,
        grid=(B, NT, H),
        in_specs=[x_spec, w_spec],
        out_specs=(o_spec, o_spec, o_spec),
        out_shape=(out, out, out),
        compiler_params=pltpu.CompilerParams(
            dimension_semantics=("parallel", "parallel", "parallel"),
            vmem_limit_bytes=64 * 1024 * 1024),
        cost_estimate=pl.CostEstimate(
            flops=int(2 * B * Np * E * 3 * E),
            transcendentals=int(3 * B * Np * E),
            bytes_accessed=int(2 * (B * Np * E + B * NT * 3 * E * E + 3 * B * Np * E))),
    )(x, wqkv_h)


# ----------------------------------------------------------------------------
# Kernel 2: chunked / block-recurrent lightning attention
#   o_i = sum_{j<=i} exp(-s_h (i-j)) (q_i.k_j) v_j
#   grid (H, B, N/(K*C)): H, B 'parallel', chunk-group axis 'arbitrary'.
#   Per grid step a (K*C, D) block is processed as K sub-chunks of size C; the
#   (D,D) f32 KV state is carried in VMEM scratch across the chunk axis.
#   Per-head decay tables (mask / q-decay / k-decay / lambda^C) are precomputed
#   inputs indexed only by the head axis (DMA'd once per head).
# ----------------------------------------------------------------------------
def _lightning_attn_kernel(bdecay_ref, qdecay_ref, kdecay_ref, mask_ref,
                           q_ref, k_ref, v_ref, o_ref, kv_ref):
    h = pl.program_id(0)
    t = pl.program_id(2)

    # Fresh recurrent KV state at the first chunk group of every (head, batch).
    @pl.when(t == 0)
    def _():
        kv_ref[...] = jnp.zeros_like(kv_ref)

    lam = bdecay_ref[h]                       # exp(-s*C), f32 scalar from SMEM
    C = mask_ref.shape[-1]                    # sub-chunk size (static)
    KC = q_ref.shape[-2]                      # rows per grid step (static)
    n_sub = KC // C

    mask = mask_ref[...]                      # (C, C) f32 causal decay
    qdec = qdecay_ref[...].astype(jnp.bfloat16)   # (C, 1)  lambda^r
    kdec = kdecay_ref[...].astype(jnp.bfloat16)   # (C, 1)  lambda^(C-r)

    # Static unroll over the K sub-chunks of this block (K is small: 2-4).
    for j in range(n_sub):
        sl = pl.ds(j * C, C)
        q = q_ref[sl, :]                      # (C, D) bf16
        k = k_ref[sl, :]
        v = v_ref[sl, :]

        # Intra-chunk: causal decayed (C,C) scores; bf16 MXU inputs, f32 acc.
        scores = lax.dot_general(q, k, (((1,), (1,)), ((), ())),
                                 preferred_element_type=jnp.float32)
        p = (scores * mask).astype(v.dtype)
        intra = jnp.dot(p, v, preferred_element_type=jnp.float32)

        # Inter-chunk: decayed query against the carried KV state (bf16 in, f32 acc).
        qd = q * qdec
        inter = jnp.dot(qd, kv_ref[...].astype(jnp.bfloat16),
                        preferred_element_type=jnp.float32)

        o_ref[sl, :] = (intra + inter).astype(o_ref.dtype)

        # State update: kv <- lambda^C * kv + (k * k_decay)^T @ v   (f32 state).
        kd = k * kdec
        kv_new = lax.dot_general(kd, v, (((0,), (0,)), ((), ())),
                                 preferred_element_type=jnp.float32)
        kv_ref[...] = lam * kv_ref[...] + kv_new


def lightning_attention(q, k, v, qdecay, kdecay, mask, block_decay, *,
                        chunk, chunks_per_step):
    B, H, Np, D = q.shape
    C = chunk
    KC = C * chunks_per_step
    NT = Np // KC
    qkv_spec = pl.BlockSpec((None, None, KC, D), lambda h, b, t: (b, h, t, 0))
    dec_spec = pl.BlockSpec((None, C, 1), lambda h, b, t: (h, 0, 0))
    mask_spec = pl.BlockSpec((None, C, C), lambda h, b, t: (h, 0, 0))
    smem_spec = pl.BlockSpec(memory_space=pltpu.MemorySpace.SMEM)
    return pl.pallas_call(
        _lightning_attn_kernel,
        grid=(H, B, NT),
        in_specs=[smem_spec, dec_spec, dec_spec, mask_spec,
                  qkv_spec, qkv_spec, qkv_spec],
        out_specs=qkv_spec,
        out_shape=jax.ShapeDtypeStruct((B, H, Np, D), jnp.bfloat16),
        scratch_shapes=[pltpu.VMEM((D, D), jnp.float32)],    # carried KV state
        compiler_params=pltpu.CompilerParams(
            dimension_semantics=("parallel", "parallel", "arbitrary"),
            vmem_limit_bytes=32 * 1024 * 1024),
        cost_estimate=pl.CostEstimate(
            flops=int(4 * B * H * Np * D * (C + D)),
            transcendentals=0,
            bytes_accessed=int(2 * 4 * B * H * Np * D
                               + 4 * H * (C * C + 2 * C + 1))),
    )(block_decay, qdecay, kdecay, mask, q, k, v)


# ----------------------------------------------------------------------------
# Kernel 3: LayerNorm + sigmoid output gate + o_proj on the head-merged layout.
#   grid (B, N-tile, E-column-tile).  The LN/gate result is computed once per
#   (b, n) tile (at the first column step) and cached in a VMEM scratch; every
#   column step then does a single merged (Tn, E) @ (E, Te) MXU matmul.
# ----------------------------------------------------------------------------
def _post_kernel(a_ref, x_ref, gamma_ref, beta_ref, wg1_ref, wg2_ref, wo_ref,
                 out_ref, gated_ref):
    @pl.when(pl.program_id(2) == 0)
    def _():
        a = a_ref[...].astype(jnp.float32)                       # (Tn, E)
        mean = jnp.mean(a, axis=-1, keepdims=True)
        cent = a - mean
        var = jnp.mean(cent * cent, axis=-1, keepdims=True)
        normed = cent * lax.rsqrt(var + 1e-5)
        normed = normed * gamma_ref[...] + beta_ref[...]

        x = x_ref[...]                                           # (Tn, E) bf16
        g1 = jnp.dot(x, wg1_ref[...],
                     preferred_element_type=jnp.float32).astype(jnp.bfloat16)
        gate = jax.nn.sigmoid(jnp.dot(g1, wg2_ref[...],
                                      preferred_element_type=jnp.float32))
        gated_ref[...] = (normed * gate).astype(gated_ref.dtype)

    out_ref[...] = jnp.dot(gated_ref[...], wo_ref[...],
                           preferred_element_type=jnp.float32).astype(out_ref.dtype)


def post_norm_gate_proj(attn, x, gamma, beta, wg1, wg2, wo, *,
                        seq_tile, col_tile, out_dtype=jnp.bfloat16):
    B, Np, E = x.shape
    Dh = wg1.shape[1]
    Tn, Te = seq_tile, col_tile
    NT, ET = Np // Tn, E // Te
    a_spec = pl.BlockSpec((None, Tn, E), lambda b, n, e: (b, n, 0))
    gb_spec = pl.BlockSpec((1, E), lambda b, n, e: (0, 0))
    wg1_spec = pl.BlockSpec((E, Dh), lambda b, n, e: (0, 0))
    wg2_spec = pl.BlockSpec((Dh, E), lambda b, n, e: (0, 0))
    wo_spec = pl.BlockSpec((E, Te), lambda b, n, e: (0, e))      # column-tiled
    out_spec = pl.BlockSpec((None, Tn, Te), lambda b, n, e: (b, n, e))
    # TODO(synk): use pipeline_mode=pl.Buffered(1) on the constant-index weight
    # specs once single-buffered pipelining is confirmed on the target jax build.
    return pl.pallas_call(
        _post_kernel,
        grid=(B, NT, ET),
        in_specs=[a_spec, a_spec, gb_spec, gb_spec, wg1_spec, wg2_spec, wo_spec],
        out_specs=out_spec,
        out_shape=jax.ShapeDtypeStruct((B, Np, E), out_dtype),
        scratch_shapes=[pltpu.VMEM((Tn, E), jnp.bfloat16)],      # cached LN*gate
        compiler_params=pltpu.CompilerParams(
            dimension_semantics=("parallel", "parallel", "arbitrary"),
            vmem_limit_bytes=96 * 1024 * 1024),
        cost_estimate=pl.CostEstimate(
            flops=int(2 * B * Np * (E * Dh + Dh * E + E * E)),
            transcendentals=int(B * Np * E),
            bytes_accessed=int(2 * (3 * B * Np * E + E * Dh + Dh * E + E * E))),
    )(attn, x, gamma, beta, wg1, wg2, wo)


# ----------------------------------------------------------------------------
# Full forward.  Only small one-time weight re-layouts and decay-table
# precomputation happen outside the kernels; the sequence is zero-padded to the
# tile granularity (zero rows are exact no-ops) and sliced back at the end.
# ----------------------------------------------------------------------------
def tnl_attention_forward(x, params, num_heads, *,
                          chunk=256, chunks_per_step=2,
                          proj_seq_tile=1024, post_seq_tile=512,
                          col_tile=512, out_dtype=jnp.bfloat16):
    B, N, E = x.shape
    H = num_heads
    D = E // H
    bf = lambda t: t.astype(jnp.bfloat16)

    # ---- tile selection (all mutually divisible; pad N to the largest tile) ----
    C = chunk
    step = C * chunks_per_step
    tn_post = max(step, (post_seq_tile // step) * step)          # multiple of step
    tn_proj = max(tn_post, (proj_seq_tile // tn_post) * tn_post) # multiple of tn_post
    n_pad = -(-N // tn_proj) * tn_proj
    te = col_tile if (E % col_tile == 0 and col_tile % 128 == 0) else E

    x_bf = bf(x)
    if n_pad != N:
        x_bf = jnp.pad(x_bf, ((0, 0), (0, n_pad - N), (0, 0)))

    # ---- fused per-head q/k/v weight slab (H, E, 3D) ----
    wq3 = params["wq"].reshape(E, H, D)
    wk3 = params["wk"].reshape(E, H, D)
    wv3 = params["wv"].reshape(E, H, D)
    wqkv_h = bf(jnp.concatenate([wq3, wk3, wv3], axis=-1).transpose(1, 0, 2))

    q, k, v = qkv_silu_heads(x_bf, wqkv_h, seq_tile=tn_proj)     # (B,H,Np,D) bf16

    # ---- per-head decay tables (precomputed once, f32) ----
    slope = params["slope"].astype(jnp.float32)                  # (H,)
    s3 = slope[:, None, None]
    r = jnp.arange(C, dtype=jnp.float32)
    qdecay = jnp.exp(-s3 * r[None, :, None])                     # (H, C, 1)
    kdecay = jnp.exp(-s3 * (C - r)[None, :, None])               # (H, C, 1)
    diff = r[:, None] - r[None, :]
    mask = jnp.exp(jnp.where(diff[None] >= 0.0, -s3 * diff[None], -jnp.inf))
    block_decay = jnp.exp(-slope * C)                            # (H,) lambda^C

    o = lightning_attention(q, k, v, qdecay, kdecay, mask, block_decay,
                            chunk=C, chunks_per_step=chunks_per_step)

    # Head merge '... h n d -> ... n (h d)'.
    # TODO(synk): when head_dim % 128 == 0 the attention kernel could write the
    # head-merged (B, N, E) layout directly and skip this XLA transpose.
    o_merged = o.transpose(0, 2, 1, 3).reshape(B, n_pad, E)

    out = post_norm_gate_proj(
        o_merged, x_bf,
        params["gamma"].astype(jnp.float32).reshape(1, E),
        params["beta"].astype(jnp.float32).reshape(1, E),
        bf(params["wg1"]), bf(params["wg2"]), bf(params["wo"]),
        seq_tile=tn_post, col_tile=te, out_dtype=out_dtype)
    return out[:, :N, :]


# ----------------------------------------------------------------------------
# Pure-JAX f32 reference for the correctness check
# ----------------------------------------------------------------------------
def reference_forward(x, params, num_heads):
    def silu(y):
        return y * jax.nn.sigmoid(y)

    B, N, E = x.shape
    D = E // num_heads
    q = silu(x @ params["wq"])
    k = silu(x @ params["wk"])
    v = silu(x @ params["wv"])

    def sh(t):
        return t.reshape(B, N, num_heads, D).transpose(0, 2, 1, 3)

    q, k, v = sh(q), sh(k), sh(v)
    s = params["slope"][None, :, None, None]
    idx = jnp.arange(N)
    diff = (idx[:, None] - idx[None, :]).astype(jnp.float32)
    decay = jnp.exp(jnp.where(diff >= 0, -s * diff, -jnp.inf))
    scores = jnp.einsum("bhnd,bhmd->bhnm", q, k)
    o = jnp.einsum("bhnm,bhmd->bhnd", scores * decay, v)
    o = o.transpose(0, 2, 1, 3).reshape(B, N, E)
    mean = o.mean(-1, keepdims=True)
    var = ((o - mean) ** 2).mean(-1, keepdims=True)
    o = (o - mean) / jnp.sqrt(var + 1e-5)
    o = o * params["gamma"][0] + params["beta"][0]
    gate = jax.nn.sigmoid((x @ params["wg1"]) @ params["wg2"])
    return (o * gate) @ params["wo"]


if __name__ == "__main__":
    # Small but structurally meaningful: N=200 exercises padding, 4 chunks of 64
    # (2 sub-chunks/step x 2 grid steps) exercise the inter-chunk recurrence,
    # head_dim=128 gives (8,128)-aligned tiles, col_tile=256 exercises the
    # column-tiled o_proj path.
    B, N, E, H = 2, 200, 512, 4
    D = E // H
    layer_idx, num_layers = 0, 12

    key = jax.random.PRNGKey(0)
    keys = jax.random.split(key, 7)

    def w(k, shape):
        return 0.02 * jax.random.normal(k, shape, jnp.float32)

    params = dict(
        wq=w(keys[0], (E, E)),
        wk=w(keys[1], (E, E)),
        wv=w(keys[2], (E, E)),
        wo=w(keys[3], (E, E)),
        wg1=w(keys[4], (E, D)),        # output_gate[0]: E -> head_dim
        wg2=w(keys[5], (D, E)),        # output_gate[1]: head_dim -> E
        gamma=jnp.ones((1, E), jnp.float32),    # LayerNorm weight
        beta=jnp.zeros((1, E), jnp.float32),    # LayerNorm bias
        slope=_build_slope_tensor(H) * (1.0 - layer_idx / (num_layers - 1) + 1e-5),
    )

    x = jax.random.normal(keys[6], (B, N, E), jnp.float32)

    out = tnl_attention_forward(x, params, H,
                                chunk=64, chunks_per_step=2,
                                proj_seq_tile=128, post_seq_tile=128,
                                col_tile=256)
    out = jax.block_until_ready(out)
    assert out.shape == (B, N, E)

    ref = reference_forward(x, params, H)
    np.testing.assert_allclose(np.asarray(out.astype(jnp.float32)),
                               np.asarray(ref), rtol=4e-2, atol=4e-2)
    print("KERNEL_OK")
</pallas_src>

<mosaic_0001>
module attributes {stable_mosaic.version = 11 : i64} {
  func.func @_qkv_silu_kernel(%arg0: i32, %arg1: i32, %arg2: i32, %arg3: memref<1x128x512xbf16, #tpu.memory_space<vmem>>, %arg4: memref<1x512x384xbf16, #tpu.memory_space<vmem>>, %arg5: memref<1x1x128x128xbf16, #tpu.memory_space<vmem>>, %arg6: memref<1x1x128x128xbf16, #tpu.memory_space<vmem>>, %arg7: memref<1x1x128x128xbf16, #tpu.memory_space<vmem>>) attributes {dimension_semantics = [#tpu.dimension_semantics<parallel>, #tpu.dimension_semantics<parallel>, #tpu.dimension_semantics<parallel>], iteration_bounds = array<i64: 2, 2, 4>, scalar_prefetch = 0 : i64, scratch_operands = 0 : i64, tpu.core_type = #tpu.core_type<tc>, window_params = [{transform_indices = @transform_0, window_bounds = array<i64: 1, 128, 512>}, {transform_indices = @transform_1, window_bounds = array<i64: 1, 512, 384>}, {transform_indices = @transform_2, window_bounds = array<i64: 1, 1, 128, 128>}, {transform_indices = @transform_3, window_bounds = array<i64: 1, 1, 128, 128>}, {transform_indices = @transform_4, window_bounds = array<i64: 1, 1, 128, 128>}]} {
    %c0 = arith.constant 0 : index
    %c0_0 = arith.constant 0 : index
    %c0_1 = arith.constant 0 : index
    %0 = vector.load %arg3[%c0, %c0_0, %c0_1] : memref<1x128x512xbf16, #tpu.memory_space<vmem>>, vector<1x128x512xbf16>
    %1 = vector.shape_cast %0 : vector<1x128x512xbf16> to vector<128x512xbf16>
    %c0_2 = arith.constant 0 : index
    %c0_3 = arith.constant 0 : index
    %c0_4 = arith.constant 0 : index
    %2 = vector.load %arg4[%c0_2, %c0_3, %c0_4] : memref<1x512x384xbf16, #tpu.memory_space<vmem>>, vector<1x512x384xbf16>
    %3 = vector.shape_cast %2 : vector<1x512x384xbf16> to vector<512x384xbf16>
    %cst = arith.constant dense<0.000000e+00> : vector<128x384xf32>
    %4 = tpu.matmul %1, %3, %cst {dimension_numbers = #tpu.dot_dimension_numbers<[1], [0], [0], [1], [0, 0, 1, 1], [], []>} : vector<128x512xbf16>, vector<512x384xbf16>, vector<128x384xf32> -> vector<128x384xf32>
    %5 = arith.negf %4 : vector<128x384xf32>
    %6 = math.exp %5 : vector<128x384xf32>
    %cst_5 = arith.constant 1.000000e+00 : f32
    %7 = vector.broadcast %cst_5 : f32 to vector<128x384xf32>
    %8 = arith.addf %7, %6 : vector<128x384xf32>
    %9 = arith.divf %7, %8 : vector<128x384xf32>
    %10 = arith.mulf %4, %9 : vector<128x384xf32>
    %11 = vector.extract_strided_slice %10 {offsets = [0, 0], sizes = [128, 128], strides = [1, 1]} : vector<128x384xf32> to vector<128x128xf32>
    %12 = arith.truncf %11 : vector<128x128xf32> to vector<128x128xbf16>
    %c0_6 = arith.constant 0 : index
    %c0_7 = arith.constant 0 : index
    %c0_8 = arith.constant 0 : index
    %c0_9 = arith.constant 0 : index
    %13 = vector.load %arg5[%c0_6, %c0_7, %c0_8, %c0_9] : memref<1x1x128x128xbf16, #tpu.memory_space<vmem>>, vector<1x1x128x128xbf16>
    %14 = vector.shape_cast %13 : vector<1x1x128x128xbf16> to vector<128x128xbf16>
    %15 = vector.shape_cast %12 : vector<128x128xbf16> to vector<1x1x128x128xbf16>
    tpu.vector_store %arg5[%c0_6, %c0_7, %c0_8, %c0_9], %15 {strides = array<i32>} : memref<1x1x128x128xbf16, #tpu.memory_space<vmem>>, vector<1x1x128x128xbf16>,
    %16 = vector.extract_strided_slice %10 {offsets = [0, 128], sizes = [128, 128], strides = [1, 1]} : vector<128x384xf32> to vector<128x128xf32>
    %17 = arith.truncf %16 : vector<128x128xf32> to vector<128x128xbf16>
    %c0_10 = arith.constant 0 : index
    %c0_11 = arith.constant 0 : index
    %c0_12 = arith.constant 0 : index
    %c0_13 = arith.constant 0 : index
    %18 = vector.load %arg6[%c0_10, %c0_11, %c0_12, %c0_13] : memref<1x1x128x128xbf16, #tpu.memory_space<vmem>>, vector<1x1x128x128xbf16>
    %19 = vector.shape_cast %18 : vector<1x1x128x128xbf16> to vector<128x128xbf16>
    %20 = vector.shape_cast %17 : vector<128x128xbf16> to vector<1x1x128x128xbf16>
    tpu.vector_store %arg6[%c0_10, %c0_11, %c0_12, %c0_13], %20 {strides = array<i32>} : memref<1x1x128x128xbf16, #tpu.memory_space<vmem>>, vector<1x1x128x128xbf16>,
    %21 = vector.extract_strided_slice %10 {offsets = [0, 256], sizes = [128, 128], strides = [1, 1]} : vector<128x384xf32> to vector<128x128xf32>
    %22 = arith.truncf %21 : vector<128x128xf32> to vector<128x128xbf16>
    %c0_14 = arith.constant 0 : index
    %c0_15 = arith.constant 0 : index
    %c0_16 = arith.constant 0 : index
    %c0_17 = arith.constant 0 : index
    %23 = vector.load %arg7[%c0_14, %c0_15, %c0_16, %c0_17] : memref<1x1x128x128xbf16, #tpu.memory_space<vmem>>, vector<1x1x128x128xbf16>
    %24 = vector.shape_cast %23 : vector<1x1x128x128xbf16> to vector<128x128xbf16>
    %25 = vector.shape_cast %22 : vector<128x128xbf16> to vector<1x1x128x128xbf16>
    tpu.vector_store %arg7[%c0_14, %c0_15, %c0_16, %c0_17], %25 {strides = array<i32>} : memref<1x1x128x128xbf16, #tpu.memory_space<vmem>>, vector<1x1x128x128xbf16>,
    return
  }
  func.func @transform_0(%arg0: i32, %arg1: i32, %arg2: i32) -> (i32, i32, i32) {
    %c0_i32 = arith.constant 0 : i32
    %c0_i32_0 = arith.constant 0 : i32
    return %arg0, %arg1, %c0_i32 : i32, i32, i32
  }
  func.func @transform_1(%arg0: i32, %arg1: i32, %arg2: i32) -> (i32, i32, i32) {
    %c0_i32 = arith.constant 0 : i32
    %c0_i32_0 = arith.constant 0 : i32
    %c0_i32_1 = arith.constant 0 : i32
    return %arg2, %c0_i32, %c0_i32_0 : i32, i32, i32
  }
  func.func @transform_2(%arg0: i32, %arg1: i32, %arg2: i32) -> (i32, i32, i32, i32) {
    %c0_i32 = arith.constant 0 : i32
    %c0_i32_0 = arith.constant 0 : i32
    return %arg0, %arg2, %arg1, %c0_i32 : i32, i32, i32, i32
  }
  func.func @transform_3(%arg0: i32, %arg1: i32, %arg2: i32) -> (i32, i32, i32, i32) {
    %c0_i32 = arith.constant 0 : i32
    %c0_i32_0 = arith.constant 0 : i32
    return %arg0, %arg2, %arg1, %c0_i32 : i32, i32, i32, i32
  }
  func.func @transform_4(%arg0: i32, %arg1: i32, %arg2: i32) -> (i32, i32, i32, i32) {
    %c0_i32 = arith.constant 0 : i32
    %c0_i32_0 = arith.constant 0 : i32
    return %arg0, %arg2, %arg1, %c0_i32 : i32, i32, i32, i32
  }
}

</mosaic_0001>

<bundles_post_ra>
// kernel: tpu_custom_call.1
= control target key start
LH: loop header
LB: loop body
LE: loop exit
PB: predicated region body
PF: predicated region fallthrough
CT: control target
= control target key end

     0   :  { %s4757_s0 = inlined_call_operand.hbm [shape: bf16[2,256,512], index: 0, kind: input, shape index: {}]   ;;  %s4758_s1 = inlined_call_operand.hbm [shape: bf16[4,512,384], index: 1, kind: input, shape index: {}]   ;;  %s4759_s2 = inlined_call_operand.hbm [shape: bf16[2,4,256,128], index: 2, kind: output, shape index: {0}]   ;;  %s4760_s3 = inlined_call_operand.hbm [shape: bf16[2,4,256,128], index: 3, kind: output, shape index: {1}]   ;;  %s4761_s4 = inlined_call_operand.hbm [shape: bf16[2,4,256,128], index: 4, kind: output, shape index: {2}]  }
   0x1   :  { %4785 = sst [smem:[#allocation28_spill]] %s4757_s0 }
   0x2   :  { %4786 = sst [smem:[#allocation29_spill]] %s4758_s1 }
   0x3   :  { %4787 = sst [smem:[#allocation30_spill]] %s4759_s2 }
   0x4   :  { %4788 = sst [smem:[#allocation31_spill]] %s4760_s3 }
   0x5   :  { %4789 = sst [smem:[#allocation32_spill]] %s4761_s4 }
   0x6   :  { %10 = vsyncpa [#allocation3], 0 }
   0x7   :  { %12 = vsyncpa [#allocation3 + $0x1], 0 }
   0x8   :  { %13 = vsyncpa [#allocation6], 0 }
   0x9   :  { %15 = vsyncpa [#allocation6 + $0x1], 0 }
   0xa   :  { %16 = vsyncpa [#allocation4], 0 }
   0xb   :  { %18 = vsyncpa [#allocation4 + $0x1], 0 }
   0xc   :  { %19 = vsyncpa [#allocation9], 0 }
   0xd   :  { %21 = vsyncpa [#allocation9 + $0x1], 0  ;;  %s3867_s15 = smov 0   ;;  %s3869_s16 = smov 0  }
   0xe   :  { %s3871_s17 = smov 0   ;;  %s3873_s18 = smov 0  }
   0xf   :  { %s3875_s19 = smov 0   ;;  %s3877_s20 = smov 0  }
  0x10   :  { %s3879_s21 = smov 0   ;;  %s3881_s22 = smov 0  }
  0x11   :  { %s3883_s23 = smov 0   ;;  %s3885_s24 = smov 0  }
  0x12   :  { %s3887_s25 = smov 0   ;;  %s3889_s26 = smov 0  }
  0x13   :  { %s3891_s27 = smov 0   ;;  %s3893_s28 = smov 0  }
  0x14   :  { %s3895_s29 = smov 0   ;;  %s3897_s30 = smov 0  }
  0x15 LB: > { %4790 = sst [smem:[#allocation15_spill]] %s3769_s15  ;;  %s3946_s5 = sadd.s32 4294967295, %s3829_s30   ;;  %s3829_s30 = sphi %s3897_s30, %s27_s30   ;;  %s3825_s29 = sphi %s3895_s29, %s4845_s29   ;;  %s3821_s28 = sphi %s3893_s28, %s4844_s28   ;;  %s3817_s27 = sphi %s3891_s27, %s4843_s27   ;;  %s3813_s26 = sphi %s3889_s26, %s4842_s26   ;;  %s3809_s25 = sphi %s3887_s25, %s4841_s25   ;;  %s3805_s24 = sphi %s3885_s24, %s4840_s24   ;;  %s3801_s23 = sphi %s3883_s23, %s4839_s23   ;;  %s3797_s22 = sphi %s3881_s22, %s4853_s22   ;;  %s3793_s21 = sphi %s3879_s21, %s4852_s21   ;;  %s3789_s20 = sphi %s3877_s20, %s4851_s20   ;;  %s3785_s19 = sphi %s3875_s19, %s4850_s19   ;;  %s3781_s18 = sphi %s3873_s18, %s4849_s18   ;;  %s3777_s17 = sphi %s3871_s17, %s4848_s17   ;;  %s3773_s16 = sphi %s3869_s16, %s4847_s16   ;;  %s3769_s15 = sphi %s3867_s15, %s4846_s15  }
  0x16   : > { %4791 = sst [smem:[#allocation16_spill]] %s3801_s23  ;;  %p62_p0 = scmp.ne.s32.totalorder %s3801_s23, %s3797_s22 }
  0x17   : > { %4792 = sst [smem:[#allocation17_spill]] %s3813_s26  ;;  %p4767_p1 = scmp.eq.s32.totalorder %s3829_s30, 0 }
  0x18   : > { %4793 = sst [smem:[#allocation18_spill]] %s3817_s27  ;;  %p68_p2 = scmp.ne.s32.totalorder %s3797_s22, %s3793_s21 }
  0x19   : > { %4794 = sst [smem:[#allocation19_spill]] %s3821_s28  ;;  %p4766_p3 = scmp.eq.s32.totalorder %s3946_s5, 0 }
  0x1a   : > { %4795 = sst [smem:[#allocation20_spill]] %s3825_s29  ;;  %p3958_p4 = por %p4767_p1, %p62_p0 }
  0x1b   : > { %4796 = sst [smem:[#allocation21_spill]] %s3946_s5  ;;  %p3965_p6 = por %p4766_p3, %p68_p2 }
  0x1c   : > { %p4765_p7 = scmp.lt.s32.totalorder %s3829_s30, 16  ;;  %s208_s11 = sand.u32 1, %s3801_s23  }
  0x1d   : > { %s4798_s10 = scalar_select %p3965_p6, 1, 0 }
  0x1e   : > { %s2407_s12 = sshll.u32 %s208_s11, 8  ;;  %s2659_s13 = sshll.u32 %s3821_s28, 6 }
  0x1f   : > { %s2410_s14 = sshll.u32 %s3825_s29, 7  ;;  %s212_s8 = scalar_lea.vmem [#allocation2], %s2407_s12 }
  0x20   : > { %s222_s21 = sshll.u32 %s212_s8, 4  ;;  %s219_s7 = sadd.s32 %s2659_s13, %s2410_s14  ;;  %s3973_s21 = int_to_ptr.vmem [resolvable:$true] %s222_s21 }
  0x21   : > { %s2411_s6 = sshll.u32 %s219_s7, 6  ;;  %p3979_p8 = pnand %p4765_p7, %p3958_p4 }
  0x22   : > { %s4800_s0 = sld [smem:[#allocation28_spill]]  ;;  %s3988_s8 = scalar_lea.sflag [#allocation3], %s208_s11 }
  0x23   : > { %p3545_p10 = pneg %p3979_p8 }
  0x28   : > { %s3986_s26 = scalar_lea.hbm %s4800_s0, %s2411_s6  ;;  %s3548_s3 = scalar_lea.hbm %s4800_s0, 16384 }
  0x29   : > { %s3543_s7 = scalar_lea.hbm %s3986_s26, 4096  ;;  %p3549_p13 = scmp.lt.u32.totalorder %s3986_s26, %s4800_s0 }
  0x2a   : > { %p3544_p9 = scmp.ne.s32.totalorder %s3986_s26, %s3543_s7  ;;  %p3550_p0 = scmp.lt.u32.totalorder %s3548_s3, %s3543_s7 }
  0x2b   : > { %p3552_p4 = scmp.lt.u32.totalorder %s3543_s7, %s3986_s26 }
  0x2c   : > { %p3546_p11 = pnand %p3545_p10, %p3544_p9  ;;  %p3551_p2 = por %p3550_p0, %p3549_p13 }
  0x2e   : > { %p3547_p12 = pneg %p3546_p11  ;;  %p3553_p7 = por %p3552_p4, %p3551_p2 }
  0x30   : > { %p3554_p5 = pnand %p3553_p7, %p3547_p12 }
  0x32   : > { %3557 = shalt.err (!%p3554_p5)
}
  0x33   : > { %s3558_s11 = scalar_lea.vmem %s3973_s21, 4096  ;;  %s3831_s13 = smov [#allocation2]  }
  0x34   : > { %p3559_p9 = scmp.ne.s32.totalorder %s3973_s21, %s3558_s11  ;;  %s3563_s14 = sshll.u32 %s3831_s13, 4  ;;  %s3564_s14 = int_to_ptr.vmem [resolvable:$false] %s3563_s14 }
  0x35   : > { %s3565_s9 = scalar_lea.vmem %s3564_s14, 8192  ;;  %p3566_p1 = scmp.lt.s32.totalorder %s3973_s21, %s3564_s14 }
  0x36   : > { %p3561_p11 = pnand %p3559_p9, %p3545_p10  ;;  %p3567_p13 = scmp.lt.s32.totalorder %s3565_s9, %s3558_s11 }
  0x38   : > { %p3562_p3 = pneg %p3561_p11  ;;  %p3568_p0 = por %p3567_p13, %p3566_p1 }
  0x3a   : > { %p3569_p2 = pnand %p3568_p0, %p3562_p3 }
  0x3c   : > { %3572 = shalt.err (!%p3569_p2)
}
  0x3d   : > { %s3832_s7 = smov 256   ;;  %s3833_s2 = smov 16  }
  0x3e   : > { %3025 = dma.hbm_to_vmem [thread:$0]  (!%p3979_p8), %s3986_s26, 4096, %s3973_s21, %s3988_s8, %s3832_s7, %s3832_s7, %s3833_s2  }
  0x3f   : > { %p2413_p1 = scmp.ge.s32.totalorder %s3829_s30, 1  ;;  %p251_p3 = scmp.lt.s32.totalorder %s3829_s30, 17 }
  0x40   : > { %s4776_s6 = sadd.s32 4294967294, %s3829_s30   ;;  %s39_s12 = sadd.s32 1, %s3817_s27 }
  0x41   : > { %p4018_p5 = pnand %p2413_p1, %p251_p3  ;;  %s81_s11 = sadd.s32 1, %s3789_s20 }
  0x42   : > { %p40_p7 = scmp.ge.s32.totalorder %s39_s12, 4  ;;  %p88_p10 = scmp.ne.s32.totalorder %s3789_s20, %s3785_s19 }
  0x43   : > { %p94_p8 = scmp.ne.s32.totalorder %s3785_s19, %s3781_s18  ;;  %s111_s4 = sadd.s32 1, %s3777_s17 }
  0x44   : > { %s4855_s12 = smov (%p40_p7, %s39_s12), 0  ;;  %s4803_s26 = sadd.s32 1, %s3821_s28 }
  0x45   : > { %4802 = sst [smem:[#allocation22_spill]] %s4855_s12  ;;  %s4857_s26 = smov (!%p40_p7, %s4803_s26), %s3821_s28 }
  0x46   : > { %s78_s21 = ssub.s32 %s3817_s27, %s4855_s12  ;;  %p4804_p12 = scmp.eq.s32.totalorder %s3829_s30, 0 }
  0x47   : > { %p44_p9 = scmp.ge.s32.totalorder %s4857_s26, 2  ;;  %p79_p11 = scmp.eq.s32.totalorder %s78_s21, 0 }
  0x48   : > { %p4039_p4 = por %p88_p10, %p4804_p12  ;;  %p4806_p13 = scmp.eq.s32.totalorder %s3946_s5, 0 }
  0x49   : > { %p121_p2 = scmp.ne.s32.totalorder %s3777_s17, %s3773_s16  ;;  %s4859_s26 = smov (%p44_p9, %s4857_s26), 0 }
  0x4a   : > { %p4045_p0 = por %p94_p8, %p4806_p13  ;;  %4808 = sst [smem:[#allocation23_spill]] %s4859_s26 }
  0x4b   : > { %s4809_s13 = sadd.s32 1, %s3825_s29  ;;  %s51_s14 = ssub.s32 %s3821_s28, %s4859_s26 }
  0x4c   : > { %s4807_s18 = scalar_select %p4045_p0, 1, 0 }
  0x4d   : > { %s4861_s13 = smov (!%p44_p9, %s4809_s13), %s3825_s29  ;;  %p4810_p1 = scmp.eq.s32.totalorder %s3946_s5, 15 }
  0x4e   : > { %p48_p7 = scmp.ge.s32.totalorder %s4861_s13, 2  ;;  %p127_p10 = scmp.ne.s32.totalorder %s3773_s16, %s3769_s15 }
  0x4f   : > { %p4060_p3 = por %p4810_p1, %p121_p2  ;;  %p128_p8 = scmp.eq.s32.totalorder %s4776_s6, 15 }
  0x50   : > { %s4067_s7 = scalar_select %p79_p11, %s3789_s20, %s81_s11  }
  0x51   : > { %s4811_s9 = scalar_select %p4060_p3, 1, 0 }
  0x52   : > { %4813 = sst [smem:[#allocation25_spill]] %s4067_s7  ;;  %s4863_s13 = smov (%p48_p7, %s4861_s13), 0 }
  0x53   : > { %4812 = sst [smem:[#allocation24_spill]] %s4811_s9  ;;  %s232_s2 = sand.u32 1, %s3789_s20  }
  0x54   : > { %4814 = sst [smem:[#allocation26_spill]] %s4863_s13  ;;  %s50_s0 = ssub.s32 %s3825_s29, %s4863_s13 }
  0x55   : > { %s52_s26 = sor.u32 %s51_s14, %s50_s0  ;;  %s106_s12 = sor.u32 %s78_s21, %s50_s0 }
  0x56   : > { %p53_p12 = scmp.eq.s32.totalorder %s52_s26, 0  ;;  %s108_s28 = sor.u32 %s106_s12, %s51_s14 }
  0x57   : > { %p109_p9 = scmp.eq.s32.totalorder %s108_s28, 0  ;;  %p4076_p13 = por %p128_p8, %p127_p10 }
  0x58   : > { %s4816_s15 = sadd.s32 1, %s3801_s23  ;;  %s3009_s7 = smul.u32 768, %s232_s2 }
  0x59   : > { %s4815_s9 = scalar_select %p4076_p13, 1, 0 }
  0x5a   : > { %s4083_s5 = scalar_select %p53_p12, %s3801_s23, %s4816_s15  }
  0x5b   : > { %s4086_s11 = scalar_select %p109_p9, %s3777_s17, %s111_s4  }
  0x5c   : > { %4817 = sst [smem:[#allocation27_spill]] %s4083_s5  ;;  %p4818_p11 = scmp.lt.s32.totalorder %s3829_s30, 16 }
  0x5d   : > { %s3010_s0 = smul.u32 12288, %s3817_s27  ;;  %s4820_s1 = sld [smem:[#allocation29_spill]] }
  0x5e   : > { %p4092_p2 = pnand %p4818_p11, %p4039_p4  ;;  %s236_s15 = scalar_lea.vmem [#allocation5], %s3009_s7 }
  0x5f   : > { %s243_s4 = sshll.u32 %s236_s15, 4  ;;  %s4104_s21 = scalar_lea.sflag [#allocation6], %s232_s2  ;;  %s4102_s4 = int_to_ptr.vmem [resolvable:$true] %s243_s4 }
  0x60   : > { %p3575_p1 = pneg %p4092_p2 }
  0x63   : > { %s4100_s26 = scalar_lea.hbm %s4820_s1, %s3010_s0  ;;  %s3578_s28 = scalar_lea.hbm %s4820_s1, 49152 }
  0x64   : > { %s3573_s8 = scalar_lea.hbm %s4100_s26, 12288  ;;  %p3579_p8 = scmp.lt.u32.totalorder %s4100_s26, %s4820_s1 }
  0x65   : > { %p3574_p4 = scmp.ne.s32.totalorder %s4100_s26, %s3573_s8  ;;  %p3580_p12 = scmp.lt.u32.totalorder %s3578_s28, %s3573_s8 }
  0x66   : > { %p3582_p11 = scmp.lt.u32.totalorder %s3573_s8, %s4100_s26 }
  0x67   : > { %p3576_p7 = pnand %p3575_p1, %p3574_p4  ;;  %p3581_p9 = por %p3580_p12, %p3579_p8 }
  0x69   : > { %p3577_p10 = pneg %p3576_p7  ;;  %p3583_p13 = por %p3582_p11, %p3581_p9 }
  0x6b   : > { %p3584_p3 = pnand %p3583_p13, %p3577_p10 }
  0x6d   : > { %3587 = shalt.err (!%p3584_p3)
}
  0x6e   : > { %s3588_s7 = scalar_lea.vmem %s4102_s4, 12288  ;;  %s3834_s2 = smov [#allocation5]  }
  0x6f   : > { %p3589_p4 = scmp.ne.s32.totalorder %s4102_s4, %s3588_s7  ;;  %s3593_s15 = sshll.u32 %s3834_s2, 4  ;;  %s3594_s15 = int_to_ptr.vmem [resolvable:$false] %s3593_s15 }
  0x70   : > { %s3595_s13 = scalar_lea.vmem %s3594_s15, 24576  ;;  %p3596_p6 = scmp.lt.s32.totalorder %s4102_s4, %s3594_s15 }
  0x71   : > { %p3591_p7 = pnand %p3589_p4, %p3575_p1  ;;  %p3597_p8 = scmp.lt.s32.totalorder %s3595_s13, %s3588_s7 }
  0x73   : > { %p3592_p0 = pneg %p3591_p7  ;;  %p3598_p12 = por %p3597_p8, %p3596_p6 }
  0x75   : > { %p3599_p9 = pnand %p3598_p12, %p3592_p0 }
  0x77   : > { %3602 = shalt.err (!%p3599_p9)
}
  0x78   : > { %s3835_s8 = smov 192   ;;  %s3836_s14 = smov 12  }
  0x79   : > { %3028 = dma.hbm_to_vmem [thread:$0]  (!%p4092_p2), %s4100_s26, 12288, %s4102_s4, %s4104_s21, %s3835_s8, %s3835_s8, %s3836_s14  }
  0x7a   : > { %255 = sbr.rel (%p4018_p5) target bundleno = 648 (0x288), region = 28  ;;  %s257_s0 = sand.u32 (!%p4018_p5), 1, %s3797_s22  }
  0x7b   : > { %s2414_s28 = sshll.u32 (!%p4018_p5), %s257_s0, 8  ;;  %s258_s12 = scalar_lea.sflag (!%p4018_p5), [#allocation3], %s257_s0 }
  0x7c   : > { %s4135_s7 = scalar_lea.vmem (!%p4018_p5), [#allocation2], %s2414_s28  ;;  %p4821_p6 = scmp.ne.s32.totalorder (!%p4018_p5), %s4798_s10, 0 }
  0x81   : > { %3752 = dma.done.wait (%p4821_p6), %s258_s12, 4096  }
  0x82   : > { %3754 = vsyncadd (%p4821_p6), %s258_s12, 4294963200  ;;  %s266_s2 = sand.u32 1, %s3785_s19   ;;  %p4822_p5 = scmp.ne.s32.totalorder %s4807_s18, 0 }
  0x83   : > { %s3011_s6 = smul.u32 768, %s266_s2  ;;  %s267_s26 = scalar_lea.sflag [#allocation6], %s266_s2 }
  0x85   : > { %s4142_s4 = scalar_lea.vmem [#allocation5], %s3011_s6 }
  0x86   : > { %3756 = dma.done.wait (%p4822_p5), %s267_s26, 12288  }
  0x87   : > { %3758 = vsyncadd (%p4822_p5), %s267_s26, 4294955008  ;;  %v3175_v0 = vld [vmem:[%s4142_s4 + $0x4] ss:$12 sps:$4 sm:$0xff]   ;;  %v3177_v1 = vld [vmem:[%s4142_s4 + $0xc8] ss:$12 sps:$4 sm:$0xff]   ;;  %s4781_s10 = sand.u32 1, %s3773_s16  }
  0x88   : > { %1147 = vmatprep.subr.bf16.mxu0 %v3175_v0  ;;  %v3178_v2 = vld [vmem:[%s4142_s4] ss:$12 sps:$4 sm:$0xff]   ;;  %2849 = vmatprep.subr.bf16.mxu1 %v3177_v1  ;;  %v3179_v3 = vld [vmem:[%s4142_s4 + $0x8] ss:$12 sps:$4 sm:$0xff]   ;;  %v3183_v6 = vld [vmem:[%s4142_s4 + $0x18] ss:$12 sps:$4 sm:$0xff]  }
  0x89   : > { %1148 = vmatpush1.bf16.msra.mxu0 %v3178_v2  ;;  %v3180_v4 = vld [vmem:[%s4142_s4 + $0x1c] ss:$12 sps:$4 sm:$0xff]   ;;  %2850 = vmatpush3.bf16.msra.mxu1 %v3179_v3  ;;  %v3182_v5 = vld [vmem:[%s4142_s4 + $0xe0] ss:$12 sps:$4 sm:$0xff]   ;;  %v3187_v9 = vld [vmem:[%s4142_s4 + $0xf8] ss:$12 sps:$4 sm:$0xff]  }
  0x8a   : > { %1149 = vmatprep.subr.bf16.mxu0 %v3180_v4  ;;  %v3184_v7 = vld [vmem:[%s4142_s4 + $0x20] ss:$12 sps:$4 sm:$0xff]   ;;  %2851 = vmatprep.subr.bf16.mxu1 %v3182_v5  ;;  %v3188_v10 = vld [vmem:[%s4142_s4 + $0x30] ss:$12 sps:$4 sm:$0xff]   ;;  %v3189_v11 = vld [vmem:[%s4142_s4 + $0x38] ss:$12 sps:$4 sm:$0xff]  }
  0x8b   : > { %v3185_v8 = vld [vmem:[%s4142_s4 + $0x34] ss:$12 sps:$4 sm:$0xff]   ;;  %v3190_v12 = vld [vmem:[%s4142_s4 + $0x4c] ss:$12 sps:$4 sm:$0xff]   ;;  %v3192_v13 = vld [vmem:[%s4142_s4 + $0x110] ss:$12 sps:$4 sm:$0xff]  }
  0x8c   : > { %v3193_v14 = vld [vmem:[%s4142_s4 + $0x48] ss:$12 sps:$4 sm:$0xff]   ;;  %v3194_v15 = vld [vmem:[%s4142_s4 + $0x50] ss:$12 sps:$4 sm:$0xff]   ;;  %v3198_v18 = vld [vmem:[%s4142_s4 + $0x60] ss:$12 sps:$4 sm:$0xff]  }
  0x8d   : > { %1150 = vmatpush1.bf16.msra.mxu0 %v3183_v6  ;;  %2852 = vmatpush3.bf16.msra.mxu1 %v3184_v7  ;;  %v3195_v16 = vld [vmem:[%s4142_s4 + $0x64] ss:$12 sps:$4 sm:$0xff]   ;;  %v3197_v17 = vld [vmem:[%s4142_s4 + $0x128] ss:$12 sps:$4 sm:$0xff]   ;;  %v3202_v21 = vld [vmem:[%s4142_s4 + $0x140] ss:$12 sps:$4 sm:$0xff]  }
  0x8e   : > { %1151 = vmatprep.subr.bf16.mxu0 %v3185_v8  ;;  %2853 = vmatprep.subr.bf16.mxu1 %v3187_v9  ;;  %v3199_v19 = vld [vmem:[%s4142_s4 + $0x68] ss:$12 sps:$4 sm:$0xff]   ;;  %v3203_v22 = vld [vmem:[%s4142_s4 + $0x78] ss:$12 sps:$4 sm:$0xff]   ;;  %v3204_v23 = vld [vmem:[%s4142_s4 + $0x80] ss:$12 sps:$4 sm:$0xff]  }
  0x8f   : > { %v3200_v20 = vld [vmem:[%s4142_s4 + $0x7c] ss:$12 sps:$4 sm:$0xff]   ;;  %v3205_v24 = vld [vmem:[%s4142_s4 + $0x94] ss:$12 sps:$4 sm:$0xff]   ;;  %v3207_v25 = vld [vmem:[%s4142_s4 + $0x158] ss:$12 sps:$4 sm:$0xff]  }
  0x90   : > { %v3208_v26 = vld [vmem:[%s4142_s4 + $0x90] ss:$12 sps:$4 sm:$0xff]   ;;  %v3209_v27 = vld [vmem:[%s4142_s4 + $0x98] ss:$12 sps:$4 sm:$0xff]   ;;  %v3213_v30 = vld [vmem:[%s4142_s4 + $0xa8] ss:$12 sps:$4 sm:$0xff]  }
  0x91   : > { %1152 = vmatpush1.bf16.msra.mxu0 %v3188_v10  ;;  %2854 = vmatpush3.bf16.msra.mxu1 %v3189_v11  ;;  %v3210_v28 = vld [vmem:[%s4142_s4 + $0xac] ss:$12 sps:$4 sm:$0xff]   ;;  %v3212_v29 = vld [vmem:[%s4142_s4 + $0x170] ss:$12 sps:$4 sm:$0xff]   ;;  %v3217_v31 = vld [vmem:[%s4135_s7 + $0x4] ss:$16 sps:$4 sm:$0xff]  }
  0x92   : > { %1153 = vmatprep.subr.bf16.mxu0 %v3190_v12  ;;  %2855 = vmatprep.subr.bf16.mxu1 %v3192_v13  ;;  %v3214_v32 = vld [vmem:[%s4142_s4 + $0xb0] ss:$12 sps:$4 sm:$0xff]   ;;  %v3220_v35 = vld [vmem:[%s4142_s4 + $0xc0] ss:$12 sps:$4 sm:$0xff]   ;;  %v4188_v37 = vld [vmem:[%s4135_s7 + $0x24] ss:$16 sps:$4 sm:$0xff]  }
  0x93   : > { %v3218_v33 = vld [vmem:[%s4142_s4 + $0xc4] ss:$12 sps:$4 sm:$0xff]   ;;  %1405 = vmatprep.mubr.bf16.mxu1 %v3217_v31  ;;  %1179 = vmatprep.mubr.bf16.mxu0 %v3217_v31  ;;  %v3221_v36 = vld [vmem:[%s4142_s4 + $0xdc] ss:$12 sps:$4 sm:$0xff]   ;;  %v3226_v39 = vld [vmem:[%s4142_s4 + $0xf4] ss:$12 sps:$4 sm:$0xff]  }
  0x94   : > { %v4183_v34 = vld [vmem:[%s4135_s7] ss:$16 sps:$4 sm:$0xff]   ;;  %v3223_v38 = vld [vmem:[%s4142_s4 + $0xd8] ss:$12 sps:$4 sm:$0xff]   ;;  %v3232_v44 = vld [vmem:[%s4142_s4 + $0x108] ss:$12 sps:$4 sm:$0xff]  }
  0x95   : > { %1154 = vmatpush1.bf16.msra.mxu0 %v3193_v14  ;;  %2856 = vmatpush3.bf16.msra.mxu1 %v3194_v15  ;;  %v4195_v40 = vld [vmem:[%s4135_s7 + $0x20] ss:$16 sps:$4 sm:$0xff]   ;;  %v3230_v42 = vld [vmem:[%s4142_s4 + $0x10c] ss:$12 sps:$4 sm:$0xff]   ;;  %v4200_v43 = vld [vmem:[%s4135_s7 + $0x44] ss:$16 sps:$4 sm:$0xff]  }
  0x96   : > { %1155 = vmatprep.subr.bf16.mxu0 %v3195_v16  ;;  %2857 = vmatprep.subr.bf16.mxu1 %v3197_v17  ;;  %v3229_v41 = vld [vmem:[%s4142_s4 + $0xf0] ss:$12 sps:$4 sm:$0xff]   ;;  %v3251_v45 = vld [vmem:[%s4142_s4 + $0x248] ss:$12 sps:$4 sm:$0xff]   ;;  %v3238_v49 = vld [vmem:[%s4142_s4 + $0x120] ss:$12 sps:$4 sm:$0xff]  }
  0x97   : > { %v3252_v46 = vld [vmem:[%s4142_s4 + $0x188] ss:$12 sps:$4 sm:$0xff]   ;;  %v3235_v47 = vld [vmem:[%s4142_s4 + $0x124] ss:$12 sps:$4 sm:$0xff]   ;;  %v3262_v52 = vld [vmem:[%s4142_s4 + $0x260] ss:$12 sps:$4 sm:$0xff]  }
  0x98   : > { %v4209_v48 = vld [vmem:[%s4135_s7 + $0x40] ss:$16 sps:$4 sm:$0xff]   ;;  %v3239_v50 = vld [vmem:[%s4142_s4 + $0x13c] ss:$12 sps:$4 sm:$0xff]   ;;  %v4214_v51 = vld [vmem:[%s4135_s7 + $0x64] ss:$16 sps:$4 sm:$0xff]  }
  0x99   : > { %1156 = vmatpush1.bf16.msra.mxu0 %v3198_v18  ;;  %2858 = vmatpush3.bf16.msra.mxu1 %v3199_v19  ;;  %v3263_v53 = vld [vmem:[%s4142_s4 + $0x1a0] ss:$12 sps:$4 sm:$0xff]   ;;  %v3241_v54 = vld [vmem:[%s4142_s4 + $0x138] ss:$12 sps:$4 sm:$0xff]   ;;  %v3247_v57 = vld [vmem:[%s4142_s4 + $0x150] ss:$12 sps:$4 sm:$0xff]  }
  0x9a   : > { %1157 = vmatprep.subr.bf16.mxu0 %v3200_v20  ;;  %2859 = vmatprep.subr.bf16.mxu1 %v3202_v21  ;;  %v3244_v55 = vld [vmem:[%s4142_s4 + $0x154] ss:$12 sps:$4 sm:$0xff]   ;;  %v3270_v58 = vld [vmem:[%s4142_s4 + $0x278] ss:$12 sps:$4 sm:$0xff]   ;;  %v3275_v62 = vld [vmem:[%s4142_s4 + $0x290] ss:$12 sps:$4 sm:$0xff]  }
  0x9b   : > { %v4223_v56 = vld [vmem:[%s4135_s7 + $0x60] ss:$16 sps:$4 sm:$0xff]   ;;  %v3271_v59 = vld [vmem:[%s4142_s4 + $0x1b8] ss:$12 sps:$4 sm:$0xff]   ;;  %v3250_v0 = vld [vmem:[%s4142_s4 + $0x168] ss:$12 sps:$4 sm:$0xff]  }
  0x9c   : > { %v3248_v60 = vld [vmem:[%s4142_s4 + $0x16c] ss:$12 sps:$4 sm:$0xff]   ;;  %v4230_v61 = vld [vmem:[%s4135_s7 + $0x84] ss:$16 sps:$4 sm:$0xff]   ;;  %v3276_v63 = vld [vmem:[%s4142_s4 + $0x1d0] ss:$12 sps:$4 sm:$0xff]  }
  0x9d   : > { %1158 = vmatpush1.bf16.msra.mxu0 %v3203_v22  ;;  %2860 = vmatpush3.bf16.msra.mxu1 %v3204_v23  ;;  %v3257_v1 = vld [vmem:[%s4142_s4 + $0x184] ss:$12 sps:$4 sm:$0xff]   ;;  %v3255_v2 = vld [vmem:[%s4142_s4 + $0x180] ss:$12 sps:$4 sm:$0xff]   ;;  %v3283_v4 = vld [vmem:[%s4142_s4 + $0x2a8] ss:$12 sps:$4 sm:$0xff]  }
  0x9e   : > { %1159 = vmatprep.subr.bf16.mxu0 %v3205_v24  ;;  %2861 = vmatprep.subr.bf16.mxu1 %v3207_v25  ;;  %v4240_v3 = vld [vmem:[%s4135_s7 + $0x80] ss:$16 sps:$4 sm:$0xff]   ;;  %v3284_v5 = vld [vmem:[%s4142_s4 + $0x1e8] ss:$12 sps:$4 sm:$0xff]   ;;  %v3259_v10 = vld [vmem:[%s4142_s4 + $0x198] ss:$12 sps:$4 sm:$0xff]  }
  0x9f   : > { %v3261_v6 = vld [vmem:[%s4142_s4 + $0x19c] ss:$12 sps:$4 sm:$0xff]   ;;  %v4246_v7 = vld [vmem:[%s4135_s7 + $0xa4] ss:$16 sps:$4 sm:$0xff]   ;;  %v3288_v8 = vld [vmem:[%s4142_s4 + $0x2c0] ss:$12 sps:$4 sm:$0xff]  }
  0xa0   : > { %v3289_v9 = vld [vmem:[%s4142_s4 + $0x200] ss:$12 sps:$4 sm:$0xff]   ;;  %v3266_v12 = vld [vmem:[%s4142_s4 + $0x1b0] ss:$12 sps:$4 sm:$0xff]   ;;  %v3296_v14 = vld [vmem:[%s4142_s4 + $0x2d8] ss:$12 sps:$4 sm:$0xff]  }
  0xa1   : > { %1160 = vmatpush1.bf16.msra.mxu0 %v3208_v26  ;;  %2862 = vmatpush3.bf16.msra.mxu1 %v3209_v27  ;;  %v3268_v11 = vld [vmem:[%s4142_s4 + $0x1b4] ss:$12 sps:$4 sm:$0xff]   ;;  %v3297_v15 = vld [vmem:[%s4142_s4 + $0x218] ss:$12 sps:$4 sm:$0xff]   ;;  %v3301_v18 = vld [vmem:[%s4142_s4 + $0x2f0] ss:$12 sps:$4 sm:$0xff]  }
  0xa2   : > { %1161 = vmatprep.subr.bf16.mxu0 %v3210_v28  ;;  %2863 = vmatprep.subr.bf16.mxu1 %v3212_v29  ;;  %v4258_v13 = vld [vmem:[%s4135_s7 + $0xa0] ss:$16 sps:$4 sm:$0xff]   ;;  %v3274_v16 = vld [vmem:[%s4142_s4 + $0x1cc] ss:$12 sps:$4 sm:$0xff]   ;;  %v4264_v17 = vld [vmem:[%s4135_s7 + $0xc4] ss:$16 sps:$4 sm:$0xff]  }
  0xa3   : > { %v3302_v19 = vld [vmem:[%s4142_s4 + $0x230] ss:$12 sps:$4 sm:$0xff]   ;;  %v3272_v20 = vld [vmem:[%s4142_s4 + $0x1c8] ss:$12 sps:$4 sm:$0xff]   ;;  %v3279_v22 = vld [vmem:[%s4142_s4 + $0x1e0] ss:$12 sps:$4 sm:$0xff]  }
  0xa4   : > { %v3281_v21 = vld [vmem:[%s4142_s4 + $0x1e4] ss:$12 sps:$4 sm:$0xff]   ;;  %v3287_v24 = vld [vmem:[%s4142_s4 + $0x1fc] ss:$12 sps:$4 sm:$0xff]   ;;  %v3294_v27 = vld [vmem:[%s4142_s4 + $0x214] ss:$12 sps:$4 sm:$0xff]  }
  0xa5   : > { %1162 = vmatpush1.bf16.msra.mxu0 %v3213_v30  ;;  %2864 = vmatpush3.bf16.msra.mxu1 %v3214_v32  ;;  %v3282_v23 = vld [vmem:[%s4135_s7 + $0xc0] ss:$16 sps:$4 sm:$0xff]   ;;  %v3290_v25 = vld [vmem:[%s4135_s7 + $0xe4] ss:$16 sps:$4 sm:$0xff]   ;;  %v3300_v30 = vld [vmem:[%s4142_s4 + $0x22c] ss:$12 sps:$4 sm:$0xff]  }
  0xa6   : > { %1163 = vmatprep.subr.bf16.mxu0 %v3218_v33  ;;  %2913 = vmatprep.subr.bf16.mxu1 %v3251_v45  ;;  %v3285_v26 = vld [vmem:[%s4142_s4 + $0x1f8] ss:$12 sps:$4 sm:$0xff]   ;;  %v3292_v28 = vld [vmem:[%s4142_s4 + $0x210] ss:$12 sps:$4 sm:$0xff]   ;;  %v3298_v32 = vld [vmem:[%s4142_s4 + $0x228] ss:$12 sps:$4 sm:$0xff]  }
  0xa7   : > { %v3295_v29 = vld [vmem:[%s4135_s7 + $0xe0] ss:$16 sps:$4 sm:$0xff]   ;;  %v3305_v31 = vld [vmem:[%s4135_s7 + $0xc] ss:$16 sps:$4 sm:$0xff]   ;;  %s4375_s3 = sshll.u32 %s4781_s10, 6  ;;  %s4823_s13 = sld [smem:[#allocation17_spill]] }
  0xa8   : > { %1406 = vmatmul.mubr.bf16.vlgmr.msra.gmra.mrb[0].mxu1 %v4183_v34  ;;  %v3308_v33 = vld [vmem:[%s4142_s4 + $0x244] ss:$12 sps:$4 sm:$0xff]   ;;  %s4395_s18 = scalar_lea.vmem [#allocation10], %s4375_s3  ;;  %s4480_s21 = scalar_lea.vmem [#allocation7], %s4375_s3 }
  0xa9   : > { %1164 = vmatpush1.bf16.msra.mxu0 %v3220_v35  ;;  %1413 = vmatprep.mubr.bf16.mxu1 %v4188_v37  ;;  %v3306_v35 = vld [vmem:[%s4142_s4 + $0x240] ss:$12 sps:$4 sm:$0xff]   ;;  %v3325_v45 = vld [vmem:[%s4142_s4 + $0x2a4] ss:$12 sps:$4 sm:$0xff]   ;;  %s4489_s15 = scalar_lea.vmem [#allocation8], %s4375_s3  ;;  %s4824_s8 = sld [smem:[#allocation21_spill]] }
  0xaa   : > { %1165 = vmatprep.subr.bf16.mxu0 %v3221_v36  ;;  %2914 = vmatpush3.bf16.msra.mxu1 %v3252_v46  ;;  %v3311_v36 = vld [vmem:[%s4142_s4 + $0x25c] ss:$12 sps:$4 sm:$0xff]   ;;  %v3323_v46 = vld [vmem:[%s4142_s4 + $0x2a0] ss:$12 sps:$4 sm:$0xff]   ;;  %s2645_s14 = sshll.u32 %s3809_s25, 4  ;;  %s2646_s0 = sshll.u32 %s3805_s24, 5 }
  0xab   : > { %2915 = vmatprep.subr.bf16.mxu1 %v3262_v52  ;;  %v3332_v52 = vld [vmem:[%s4142_s4 + $0x2d0] ss:$12 sps:$4 sm:$0xff]   ;;  %s2166_s28 = sadd.s32 %s2646_s0, %s2645_s14  ;;  %s2211_s6 = sshll.u32 %s4395_s18, 4  ;;  %s4605_s6 = int_to_ptr.vmem [resolvable:$true] %s2211_s6 }
  0xac   : > { %s2191_s24 = sshll.u32 %s4489_s15, 4  ;;  %s4825_s25 = sld [smem:[#allocation24_spill]]  ;;  %s4603_s24 = int_to_ptr.vmem [resolvable:$true] %s2191_s24 }
  0xad   : > { %1166 = vmatpush1.bf16.msra.mxu0 %v3223_v38  ;;  %v3309_v38 = vld [vmem:[%s4142_s4 + $0x258] ss:$12 sps:$4 sm:$0xff]   ;;  %s2647_s12 = sshll.u32 %s4823_s13, 7  ;;  %s4826_s13 = sld [smem:[#allocation30_spill]] }
  0xae   : > { %1167 = vmatprep.subr.bf16.mxu0 %v3226_v39  ;;  %2916 = vmatpush3.bf16.msra.mxu1 %v3263_v53  ;;  %v3316_v39 = vld [vmem:[%s4142_s4 + $0x274] ss:$12 sps:$4 sm:$0xff]   ;;  %v3335_v53 = vld [vmem:[%s4135_s7 + $0x68] ss:$16 sps:$4 sm:$0xff]   ;;  %s4830_s29 = sand.u32 1, %s3773_s16   ;;  %s3837_s0 = smov [#allocation7]  }
  0xaf   : > { %2917 = vmatprep.subr.bf16.mxu1 %v3270_v58  ;;  %v3342_v58 = vld [vmem:[%s4135_s7 + $0xac] ss:$16 sps:$4 sm:$0xff]   ;;  %s4616_s27 = scalar_lea.sflag [#allocation4], %s4830_s29 }
  0xb0   : > { %1414 = vmatmul.mubr.bf16.gmra.mrb[4].mxu1 %v4195_v40 }
  0xb1   : > { %1168 = vmatpush1.bf16.msra.mxu0 %v3229_v41  ;;  %1421 = vmatprep.mubr.bf16.mxu1 %v4200_v43  ;;  %v3317_v41 = vld [vmem:[%s4135_s7 + $0x28] ss:$16 sps:$4 sm:$0xff]  }
  0xb2   : > { %1169 = vmatprep.subr.bf16.mxu0 %v3230_v42  ;;  %2918 = vmatpush3.bf16.msra.mxu1 %v3271_v59  ;;  %v3320_v42 = vld [vmem:[%s4142_s4 + $0x28c] ss:$12 sps:$4 sm:$0xff]   ;;  %p4831_p3 = scmp.ne.s32.totalorder %s4825_s25, 0 }
  0xb3   : > { %2919 = vmatprep.subr.bf16.mxu1 %v3275_v62  ;;  %v3344_v59 = vld [vmem:[%s4135_s7 + $0xa8] ss:$16 sps:$4 sm:$0xff]   ;;  %v3348_v62 = vld [vmem:[%s4135_s7 + $0xec] ss:$16 sps:$4 sm:$0xff]  }
  0xb5   : > { %1170 = vmatpush1.bf16.msra.mxu0 %v3232_v44  ;;  %v3318_v44 = vld [vmem:[%s4142_s4 + $0x288] ss:$12 sps:$4 sm:$0xff]  }
  0xb6   : > { %1171 = vmatprep.subr.bf16.mxu0 %v3235_v47  ;;  %2920 = vmatpush3.bf16.msra.mxu1 %v3276_v63  ;;  %v3326_v47 = vld [vmem:[%s4135_s7 + $0x48] ss:$16 sps:$4 sm:$0xff]  }
  0xb7   : > { %2921 = vmatprep.subr.bf16.mxu1 %v3283_v4  ;;  %v3350_v63 = vld [vmem:[%s4135_s7 + $0xe8] ss:$16 sps:$4 sm:$0xff]  }
  0xb8   : > { %1422 = vmatmul.mubr.bf16.gmra.mrb[8].mxu1 %v4209_v48 }
  0xb9   : > { %1172 = vmatpush1.bf16.msra.mxu0 %v3238_v49  ;;  %1429 = vmatprep.mubr.bf16.mxu1 %v4214_v51  ;;  %v3330_v49 = vld [vmem:[%s4135_s7 + $0x6c] ss:$16 sps:$4 sm:$0xff]  }
  0xba   : > { %1173 = vmatprep.subr.bf16.mxu0 %v3239_v50  ;;  %2922 = vmatpush3.bf16.msra.mxu1 %v3284_v5  ;;  %v3327_v50 = vld [vmem:[%s4142_s4 + $0x2b8] ss:$12 sps:$4 sm:$0xff]  }
  0xbb   : > { %2923 = vmatprep.subr.bf16.mxu1 %v3288_v8 }
  0xbd   : > { %1174 = vmatpush1.bf16.msra.mxu0 %v3241_v54  ;;  %v3338_v54 = vld [vmem:[%s4142_s4 + $0x2ec] ss:$12 sps:$4 sm:$0xff]  }
  0xbe   : > { %1175 = vmatprep.subr.bf16.mxu0 %v3244_v55  ;;  %2924 = vmatpush3.bf16.msra.mxu1 %v3289_v9  ;;  %v3339_v55 = vld [vmem:[%s4135_s7 + $0x8c] ss:$16 sps:$4 sm:$0xff]  }
  0xbf   : > { %2925 = vmatprep.subr.bf16.mxu1 %v3296_v14 }
  0xc0   : > { %1430 = vmatmul.mubr.bf16.gmra.mrb[12].mxu1 %v4223_v56 }
  0xc1   : > { %1176 = vmatpush1.bf16.msra.mxu0 %v3247_v57  ;;  %1437 = vmatprep.mubr.bf16.mxu1 %v4230_v61  ;;  %v3341_v57 = vld [vmem:[%s4135_s7 + $0x88] ss:$16 sps:$4 sm:$0xff]  }
  0xc2   : > { %1177 = vmatprep.subr.bf16.mxu0 %v3248_v60  ;;  %2926 = vmatpush3.bf16.msra.mxu1 %v3297_v15  ;;  %v3345_v60 = vld [vmem:[%s4135_s7 + $0xcc] ss:$16 sps:$4 sm:$0xff]  }
  0xc3   : > { %2927 = vmatprep.subr.bf16.mxu1 %v3301_v18 }
  0xc5   : > { %1178 = vmatpush1.bf16.msra.mxu0 %v3250_v0 }
  0xc6   : > { %1260 = vmatprep.subr.bf16.mxu0 %v3257_v1  ;;  %2928 = vmatpush3.bf16.msra.mxu1 %v3302_v19 }
  0xc8   : > { %1180 = vmatmul.mubr.bf16.vlgmr.msra.gmra.mrb[0].mxu0 %v4183_v34  ;;  %1438 = vmatmul.mubr.bf16.gmra.mrb[16].mxu1 %v4240_v3  ;;  %v3303_v34 = vld [vmem:[%s4135_s7 + $0x8] ss:$16 sps:$4 sm:$0xff]  }
  0xc9   : > { %1261 = vmatpush1.bf16.msra.mxu0 %v3255_v2  ;;  %1189 = vmatprep.mubr.bf16.mxu0 %v4188_v37  ;;  %v3312_v37 = vld [vmem:[%s4135_s7 + $0x2c] ss:$16 sps:$4 sm:$0xff]  }
  0xca   : > { %1262 = vmatprep.subr.bf16.mxu0 %v3261_v6  ;;  %1445 = vmatprep.mubr.bf16.mxu1 %v4246_v7 }
  0xcd   : > { %1263 = vmatpush1.bf16.msra.mxu0 %v3259_v10 }
  0xce   : > { %1264 = vmatprep.subr.bf16.mxu0 %v3268_v11 }
  0xd0   : > { %1190 = vmatmul.mubr.bf16.gmra.mrb[4].mxu0 %v4195_v40  ;;  %1446 = vmatmul.mubr.bf16.gmra.mrb[20].mxu1 %v4258_v13  ;;  %v3314_v40 = vld [vmem:[%s4142_s4 + $0x270] ss:$12 sps:$4 sm:$0xff]  }
  0xd1   : > { %1265 = vmatpush1.bf16.msra.mxu0 %v3266_v12  ;;  %1199 = vmatprep.mubr.bf16.mxu0 %v4200_v43  ;;  %v3321_v43 = vld [vmem:[%s4135_s7 + $0x4c] ss:$16 sps:$4 sm:$0xff]  }
  0xd2   : > { %1266 = vmatprep.subr.bf16.mxu0 %v3274_v16  ;;  %1453 = vmatprep.mubr.bf16.mxu1 %v4264_v17 }
  0xd5   : > { %1267 = vmatpush1.bf16.msra.mxu0 %v3272_v20 }
  0xd6   : > { %1268 = vmatprep.subr.bf16.mxu0 %v3281_v21 }
  0xd8   : > { %1200 = vmatmul.mubr.bf16.gmra.mrb[8].mxu0 %v4209_v48  ;;  %1454 = vmatmul.mubr.bf16.gmra.mrb[24].mxu1 %v3282_v23  ;;  %v3329_v48 = vld [vmem:[%s4142_s4 + $0x2bc] ss:$12 sps:$4 sm:$0xff]  }
  0xd9   : > { %1269 = vmatpush1.bf16.msra.mxu0 %v3279_v22  ;;  %1209 = vmatprep.mubr.bf16.mxu0 %v4214_v51  ;;  %v3334_v51 = vld [vmem:[%s4142_s4 + $0x2d4] ss:$12 sps:$4 sm:$0xff]  }
  0xda   : > { %1270 = vmatprep.subr.bf16.mxu0 %v3287_v24  ;;  %1461 = vmatprep.mubr.bf16.mxu1 %v3290_v25 }
  0xdd   : > { %1271 = vmatpush1.bf16.msra.mxu0 %v3285_v26 }
  0xde   : > { %1272 = vmatprep.subr.bf16.mxu0 %v3294_v27 }
  0xe0   : > { %1210 = vmatmul.mubr.bf16.gmra.mrb[12].mxu0 %v4223_v56  ;;  %1462 = vmatmul.mubr.bf16.gmra.mrb[28].mxu1 %v3295_v29  ;;  %v3336_v56 = vld [vmem:[%s4142_s4 + $0x2e8] ss:$12 sps:$4 sm:$0xff]   ;;  %s2171_s4 = sshll.u32 %s4480_s21, 4  ;;  %s4596_s4 = int_to_ptr.vmem [resolvable:$true] %s2171_s4 }
  0xe1   : > { %1273 = vmatpush1.bf16.msra.mxu0 %v3292_v28  ;;  %1219 = vmatprep.mubr.bf16.mxu0 %v4230_v61  ;;  %v3347_v61 = vld [vmem:[%s4135_s7 + $0xc8] ss:$16 sps:$4 sm:$0xff]   ;;  %s2168_s7 = sadd.s32 %s2647_s12, %s2166_s28  ;;  %s4827_s12 = sld [smem:[#allocation31_spill]] }
  0xe2   : > { %1274 = vmatprep.subr.bf16.mxu0 %v3300_v30  ;;  %1502 = vmatprep.mubr.bf16.mxu1 %v3305_v31  ;;  %s2648_s26 = sshll.u32 %s2168_s7, 6  ;;  %s3603_s5 = scalar_lea.vmem %s4596_s4, 1024 }
  0xe3   : > { %s4594_s14 = scalar_lea.hbm %s4826_s13, %s2648_s26  ;;  %p3604_p0 = scmp.ne.s32.totalorder %s4596_s4, %s3603_s5 }
  0xe4   : > { %s3607_s28 = sshll.u32 %s3837_s0, 4  ;;  %s3608_s28 = int_to_ptr.vmem [resolvable:$false] %s3607_s28 }
  0xe5   : > { %1275 = vmatpush1.bf16.msra.mxu0 %v3298_v32  ;;  %p3605_p13 = pnand %p3604_p0, %p4831_p3  ;;  %s3609_s23 = scalar_lea.vmem %s3608_s28, 2048 }
  0xe6   : > { %1276 = vmatprep.subr.bf16.mxu0 %v3308_v33  ;;  %p3610_p1 = scmp.lt.s32.totalorder %s4596_s4, %s3608_s28  ;;  %p3611_p10 = scmp.lt.s32.totalorder %s3609_s23, %s3603_s5 }
  0xe7   : > { %s4601_s7 = scalar_lea.hbm %s4827_s12, %s2648_s26  ;;  %p3606_p2 = pneg %p3605_p13 }
  0xe8   : > { %1220 = vmatmul.mubr.bf16.gmra.mrb[16].mxu0 %v4240_v3  ;;  %1503 = vmatmul.mubr.bf16.vlgmr.msra.gmra.mrb[32].mxu1 %v3303_v34  ;;  %p3612_p11 = por %p3611_p10, %p3610_p1 }
  0xe9   : > { %1277 = vmatpush1.bf16.msra.mxu0 %v3306_v35  ;;  %1229 = vmatprep.mubr.bf16.mxu0 %v4246_v7 }
  0xea   : > { %1278 = vmatprep.subr.bf16.mxu0 %v3311_v36  ;;  %1510 = vmatprep.mubr.bf16.mxu1 %v3312_v37  ;;  %p3613_p4 = pnand %p3612_p11, %p3606_p2 }
  0xed   : > { %1279 = vmatpush1.bf16.msra.mxu0 %v3309_v38 }
  0xee   : > { %1280 = vmatprep.subr.bf16.mxu0 %v3316_v39 }
  0xf0   : > { %1230 = vmatmul.mubr.bf16.gmra.mrb[20].mxu0 %v4258_v13  ;;  %1511 = vmatmul.mubr.bf16.gmra.mrb[36].mxu1 %v3317_v41 }
  0xf1   : > { %1281 = vmatpush1.bf16.msra.mxu0 %v3314_v40  ;;  %1239 = vmatprep.mubr.bf16.mxu0 %v4264_v17 }
  0xf2   : > { %1282 = vmatprep.subr.bf16.mxu0 %v3320_v42  ;;  %1518 = vmatprep.mubr.bf16.mxu1 %v3321_v43 }
  0xf5   : > { %1283 = vmatpush1.bf16.msra.mxu0 %v3318_v44 }
  0xf6   : > { %1284 = vmatprep.subr.bf16.mxu0 %v3325_v45 }
  0xf8   : > { %1240 = vmatmul.mubr.bf16.gmra.mrb[24].mxu0 %v3282_v23  ;;  %1519 = vmatmul.mubr.bf16.gmra.mrb[40].mxu1 %v3326_v47 }
  0xf9   : > { %1285 = vmatpush1.bf16.msra.mxu0 %v3323_v46  ;;  %1249 = vmatprep.mubr.bf16.mxu0 %v3290_v25 }
  0xfa   : > { %1286 = vmatprep.subr.bf16.mxu0 %v3329_v48  ;;  %1526 = vmatprep.mubr.bf16.mxu1 %v3330_v49 }
  0xfd   : > { %1287 = vmatpush1.bf16.msra.mxu0 %v3327_v50 }
  0xfe   : > { %1288 = vmatprep.subr.bf16.mxu0 %v3334_v51 }
 0x100   : > { %1250 = vmatmul.mubr.bf16.gmra.mrb[28].mxu0 %v3295_v29  ;;  %1527 = vmatmul.mubr.bf16.gmra.mrb[44].mxu1 %v3335_v53 }
 0x101   : > { %1289 = vmatpush1.bf16.msra.mxu0 %v3332_v52  ;;  %1292 = vmatprep.mubr.bf16.mxu0 %v3305_v31 }
 0x102   : > { %1290 = vmatprep.subr.bf16.mxu0 %v3338_v54  ;;  %1534 = vmatprep.mubr.bf16.mxu1 %v3339_v55 }
 0x105   : > { %1291 = vmatpush1.bf16.msra.mxu0 %v3336_v56 }
 0x108   : > { %1293 = vmatmul.mubr.bf16.vlgmr.msra.gmra.mrb[0].mxu0 %v3303_v34  ;;  %1535 = vmatmul.mubr.bf16.gmra.mrb[48].mxu1 %v3341_v57 }
 0x109   : > { %1302 = vmatprep.mubr.bf16.mxu0 %v3312_v37  ;;  %1542 = vmatprep.mubr.bf16.mxu1 %v3342_v58 }
 0x110   : > { %1303 = vmatmul.mubr.bf16.gmra.mrb[4].mxu0 %v3317_v41  ;;  %1543 = vmatmul.mubr.bf16.gmra.mrb[52].mxu1 %v3344_v59 }
 0x111   : > { %1312 = vmatprep.mubr.bf16.mxu0 %v3321_v43  ;;  %1550 = vmatprep.mubr.bf16.mxu1 %v3345_v60 }
 0x118   : > { %1313 = vmatmul.mubr.bf16.gmra.mrb[8].mxu0 %v3326_v47  ;;  %1551 = vmatmul.mubr.bf16.gmra.mrb[56].mxu1 %v3347_v61 }
 0x119   : > { %1322 = vmatprep.mubr.bf16.mxu0 %v3330_v49  ;;  %1558 = vmatprep.mubr.bf16.mxu1 %v3348_v62 }
 0x120   : > { %1323 = vmatmul.mubr.bf16.gmra.mrb[12].mxu0 %v3335_v53  ;;  %1559 = vmatmul.mubr.bf16.gmra.mrb[60].mxu1 %v3350_v63 }
 0x121   : > { %1332 = vmatprep.mubr.bf16.mxu0 %v3339_v55 }
 0x128   : > { %1333 = vmatmul.mubr.bf16.gmra.mrb[16].mxu0 %v3341_v57 }
 0x129   : > { %1342 = vmatprep.mubr.bf16.mxu0 %v3342_v58 }
 0x130   : > { %1343 = vmatmul.mubr.bf16.gmra.mrb[20].mxu0 %v3344_v59 }
 0x131   : > { %1352 = vmatprep.mubr.bf16.mxu0 %v3345_v60 }
 0x138   : > { %1353 = vmatmul.mubr.bf16.gmra.mrb[24].mxu0 %v3347_v61 }
 0x139   : > { %1362 = vmatprep.mubr.bf16.mxu0 %v3348_v62 }
 0x140   : > { %1363 = vmatmul.mubr.bf16.gmra.mrb[28].mxu0 %v3350_v63 }
 0x17b   : > { %v2865_v0 = vpop.f32.mrb[0].mxu1 }
 0x17c   : > { %v2866_v1 = vpop.f32.mrb[1].mxu1 }
 0x17d   : > { %v2867_v2 = vadd.f32 %v2866_v1, %v2865_v0  ;;  %v2868_v3 = vpop.f32.mrb[2].mxu1 }
 0x17e   : > { %v2869_v4 = vpop.f32.mrb[3].mxu1 }
 0x17f   : > { %v2870_v5 = vadd.f32 %v2869_v4, %v2868_v3 }
 0x183   : > { %v2871_v6 = vpop.f32.mrb[4].mxu1 }
 0x184   : > { %v2872_v7 = vpop.f32.mrb[5].mxu1 }
 0x185   : > { %v2873_v8 = vadd.f32 %v2872_v7, %v2871_v6  ;;  %v2874_v9 = vpop.f32.mrb[6].mxu1 }
 0x186   : > { %v2875_v10 = vpop.f32.mrb[7].mxu1 }
 0x187   : > { %v2876_v11 = vadd.f32 %v2875_v10, %v2874_v9 }
 0x18b   : > { %v2877_v12 = vpop.f32.mrb[8].mxu1 }
 0x18c   : > { %v2878_v13 = vpop.f32.mrb[9].mxu1 }
 0x18d   : > { %v4324_v14 = vadd.f32 %v2878_v13, %v2877_v12  ;;  %v2880_v15 = vpop.f32.mrb[10].mxu1 }
 0x18e   : > { %v2881_v16 = vpop.f32.mrb[11].mxu1 }
 0x18f   : > { %v4326_v17 = vadd.f32 %v2881_v16, %v2880_v15 }
 0x193   : > { %v2883_v18 = vpop.f32.mrb[12].mxu1 }
 0x194   : > { %v2884_v19 = vpop.f32.mrb[13].mxu1 }
 0x195   : > { %v4328_v20 = vadd.f32 %v2884_v19, %v2883_v18  ;;  %v2886_v21 = vpop.f32.mrb[14].mxu1 }
 0x196   : > { %v2887_v22 = vpop.f32.mrb[15].mxu1 }
 0x197   : > { %v4330_v23 = vadd.f32 %v2887_v22, %v2886_v21 }
 0x19b   : > { %v2889_v24 = vpop.f32.mrb[16].mxu1 }
 0x19c   : > { %v2890_v25 = vpop.f32.mrb[17].mxu1 }
 0x19d   : > { %v4332_v26 = vadd.f32 %v2890_v25, %v2889_v24  ;;  %v2892_v27 = vpop.f32.mrb[18].mxu1 }
 0x19e   : > { %v2893_v28 = vpop.f32.mrb[19].mxu1 }
 0x19f   : > { %v4334_v29 = vadd.f32 %v2893_v28, %v2892_v27 }
 0x1a3   : > { %v2895_v30 = vpop.f32.mrb[20].mxu1 }
 0x1a4   : > { %v2896_v31 = vpop.f32.mrb[21].mxu1 }
 0x1a5   : > { %v4336_v32 = vadd.f32 %v2896_v31, %v2895_v30  ;;  %v2898_v33 = vpop.f32.mrb[22].mxu1 }
 0x1a6   : > { %v2899_v34 = vpop.f32.mrb[23].mxu1 }
 0x1a7   : > { %v4338_v35 = vadd.f32 %v2899_v34, %v2898_v33 }
 0x1ab   : > { %v2901_v36 = vpop.f32.mrb[24].mxu1 }
 0x1ac   : > { %v2902_v37 = vpop.f32.mrb[25].mxu1 }
 0x1ad   : > { %v4340_v38 = vadd.f32 %v2902_v37, %v2901_v36  ;;  %v2904_v39 = vpop.f32.mrb[26].mxu1 }
 0x1ae   : > { %v2905_v40 = vpop.f32.mrb[27].mxu1 }
 0x1af   : > { %v4342_v41 = vadd.f32 %v2905_v40, %v2904_v39 }
 0x1b3   : > { %v2907_v42 = vpop.f32.mrb[28].mxu1 }
 0x1b4   : > { %v2908_v43 = vpop.f32.mrb[29].mxu1 }
 0x1b5   : > { %v4344_v44 = vadd.f32 %v2908_v43, %v2907_v42  ;;  %v2910_v45 = vpop.f32.mrb[30].mxu1 }
 0x1b6   : > { %v2911_v46 = vpop.f32.mrb[31].mxu1 }
 0x1b7   : > { %v4346_v47 = vadd.f32 %v2911_v46, %v2910_v45 }
 0x1bb   : > { %v2929_v48 = vpop.f32.mrb[32].mxu1 }
 0x1bc   : > { %v2930_v49 = vpop.f32.mrb[33].mxu1 }
 0x1bd   : > { %v2931_v50 = vadd.f32 %v2930_v49, %v2929_v48  ;;  %v2932_v51 = vpop.f32.mrb[34].mxu1 }
 0x1be   : > { %v2933_v52 = vpop.f32.mrb[35].mxu1 }
 0x1bf   : > { %v1505_v53 = vadd.f32 %v2931_v50, %v2867_v2  ;;  %v2934_v54 = vadd.f32 %v2933_v52, %v2932_v51 }
 0x1c1   : > { %v2548_v55 = vmul.f32 -1.442695, %v1505_v53  ;;  %v4348_v56 = vadd.f32 %v2934_v54, %v2870_v5 }
 0x1c3   : > { %3351 = vpow2.f32 %v2548_v55  ;;  %v2551_v57 = vmul.f32 -1.442695, %v4348_v56  ;;  %v2935_v58 = vpop.f32.mrb[36].mxu1 }
 0x1c4   : > { %v2936_v59 = vpop.f32.mrb[37].mxu1 }
 0x1c5   : > { %3353 = vpow2.f32 %v2551_v57  ;;  %v2937_v60 = vadd.f32 %v2936_v59, %v2935_v58  ;;  %v2938_v61 = vpop.f32.mrb[38].mxu1 }
 0x1c6   : > { %v2939_v62 = vpop.f32.mrb[39].mxu1 }
 0x1c7   : > { %v4351_v63 = vadd.f32 %v2937_v60, %v2873_v8  ;;  %v2940_v0 = vadd.f32 %v2939_v62, %v2938_v61 }
 0x1c9   : > { %v2554_v1 = vmul.f32 -1.442695, %v4351_v63  ;;  %v4354_v3 = vadd.f32 %v2940_v0, %v2876_v11 }
 0x1cb   : > { %3355 = vpow2.f32 %v2554_v1  ;;  %v2557_v2 = vmul.f32 -1.442695, %v4354_v3  ;;  %v2941_v4 = vpop.f32.mrb[40].mxu1 }
 0x1cc   : > { %v2942_v5 = vpop.f32.mrb[41].mxu1 }
 0x1cd   : > { %v3352_v6 = vpop.eup %3351  ;;  %3357 = vpow2.f32 %v2557_v2  ;;  %v2943_v7 = vadd.f32 %v2942_v5, %v2941_v4  ;;  %v2944_v9 = vpop.f32.mrb[42].mxu1 }
 0x1ce   : > { %v1713_v10 = vadd.f32 1.0, %v3352_v6  ;;  %v2945_v12 = vpop.f32.mrb[43].mxu1 }
 0x1cf   : > { %v3354_v13 = vpop.eup %3353  ;;  %v4358_v8 = vadd.f32 %v2943_v7, %v4324_v14  ;;  %v2946_v15 = vadd.f32 %v2945_v12, %v2944_v9 }
 0x1d0   : > { %3359 = vrcp.f32 %v1713_v10  ;;  %v1716_v11 = vadd.f32 1.0, %v3354_v13 }
 0x1d1   : > { %v2560_v16 = vmul.f32 -1.442695, %v4358_v8  ;;  %v4362_v18 = vadd.f32 %v2946_v15, %v4326_v17 }
 0x1d2   : > { %3361 = vrcp.f32 %v1716_v11 }
 0x1d3   : > { %3363 = vpow2.f32 %v2560_v16  ;;  %v2563_v19 = vmul.f32 -1.442695, %v4362_v18  ;;  %v2947_v21 = vpop.f32.mrb[44].mxu1 }
 0x1d4   : > { %v2948_v22 = vpop.f32.mrb[45].mxu1 }
 0x1d5   : > { %v3356_v24 = vpop.eup %3355  ;;  %3365 = vpow2.f32 %v2563_v19  ;;  %v2949_v14 = vadd.f32 %v2948_v22, %v2947_v21  ;;  %v2950_v25 = vpop.f32.mrb[46].mxu1 }
 0x1d6   : > { %v1719_v27 = vadd.f32 1.0, %v3356_v24  ;;  %v2951_v28 = vpop.f32.mrb[47].mxu1 }
 0x1d7   : > { %v3358_v30 = vpop.eup %3357  ;;  %v4367_v31 = vadd.f32 %v2949_v14, %v4328_v20  ;;  %v2952_v17 = vadd.f32 %v2951_v28, %v2950_v25 }
 0x1d8   : > { %3367 = vrcp.f32 %v1719_v27  ;;  %v1722_v33 = vadd.f32 1.0, %v3358_v30 }
 0x1d9   : > { %v2566_v34 = vmul.f32 -1.442695, %v4367_v31  ;;  %v4371_v36 = vadd.f32 %v2952_v17, %v4330_v23 }
 0x1da   : > { %v3360_v37 = vpop.eup %3359  ;;  %3369 = vrcp.f32 %v1722_v33 }
 0x1db   : > { %v4377_v39 = vpop.f32.mrb[0].mxu0  ;;  %3371 = vpow2.f32 %v2566_v34  ;;  %v2569_v40 = vmul.f32 -1.442695, %v4371_v36  ;;  %v2953_v42 = vpop.f32.mrb[48].mxu1  ;;  %v1857_v46 = vmul.f32 %v3360_v37, %v1505_v53 }
 0x1dc   : > { %v2546_v20 = vmul.f32 -1.442695, %v4377_v39  ;;  %v4381_v43 = vpop.f32.mrb[1].mxu0  ;;  %v3362_v45 = vpop.eup %3361 }
 0x1dd   : > { %v2547_v23 = vmul.f32 -1.442695, %v4381_v43  ;;  %v2954_v48 = vpop.f32.mrb[49].mxu1  ;;  %v4384_v49 = vpop.f32.mrb[2].mxu0  ;;  %v1860_v51 = vmul.f32 %v3362_v45, %v4348_v56  ;;  %3373 = vpow2.f32 %v2569_v40 }
 0x1de   : > { %v3364_v50 = vpop.eup %3363  ;;  %v2955_v52 = vadd.f32 %v2954_v48, %v2953_v42  ;;  %v2549_v54 = vmul.f32 -1.442695, %v4384_v49  ;;  %v2956_v55 = vpop.f32.mrb[50].mxu1  ;;  %3375 = vpow2.f32 %v2546_v20 }
 0x1df   : > { %v4388_v57 = vpop.f32.mrb[3].mxu0  ;;  %v1725_v58 = vadd.f32 1.0, %v3364_v50  ;;  %v2957_v59 = vpop.f32.mrb[51].mxu1  ;;  %v2791_v60 = vpack.c.bf16 %v1860_v51, %v1857_v46  ;;  %3377 = vpow2.f32 %v2547_v23 }
 0x1e0   : > { %v3366_v53 = vpop.eup %3365  ;;  %v4391_v61 = vadd.f32 %v2955_v52, %v4332_v26  ;;  %v2958_v62 = vadd.f32 %v2957_v59, %v2956_v55  ;;  %v2550_v0 = vmul.f32 -1.442695, %v4388_v57 }
 0x1e1   : > { %3379 = vrcp.f32 %v1725_v58  ;;  %v1728_v56 = vadd.f32 1.0, %v3366_v53  ;;  %2792 = vst [vmem:[%s4395_s18] sm:$0xff] %v2791_v60  }
 0x1e2   : > { %v2572_v1 = vmul.f32 -1.442695, %v4391_v61  ;;  %3381 = vpow2.f32 %v2549_v54  ;;  %v4400_v2 = vadd.f32 %v2958_v62, %v4334_v29  ;;  %v3368_v4 = vpop.eup %3367 }
 0x1e3   : > { %3383 = vrcp.f32 %v1728_v56  ;;  %v4402_v5 = vpop.f32.mrb[4].mxu0  ;;  %v2959_v7 = vpop.f32.mrb[52].mxu1  ;;  %v1863_v12 = vmul.f32 %v3368_v4, %v4351_v63 }
 0x1e4   : > { %3385 = vpow2.f32 %v2572_v1  ;;  %v2575_v26 = vmul.f32 -1.442695, %v4400_v2  ;;  %v2552_v6 = vmul.f32 -1.442695, %v4402_v5  ;;  %v4406_v9 = vpop.f32.mrb[5].mxu0  ;;  %v3370_v10 = vpop.eup %3369 }
 0x1e5   : > { %3387 = vpow2.f32 %v2550_v0  ;;  %v2553_v13 = vmul.f32 -1.442695, %v4406_v9  ;;  %v2960_v29 = vpop.f32.mrb[53].mxu1  ;;  %v4410_v15 = vpop.f32.mrb[6].mxu0  ;;  %v1866_v16 = vmul.f32 %v3370_v10, %v4354_v3 }
 0x1e6   : > { %v3372_v11 = vpop.eup %3371  ;;  %3389 = vpow2.f32 %v2575_v26  ;;  %v2961_v19 = vadd.f32 %v2960_v29, %v2959_v7  ;;  %v2555_v21 = vmul.f32 -1.442695, %v4410_v15  ;;  %v2962_v22 = vpop.f32.mrb[54].mxu1 }
 0x1e7   : > { %v4414_v24 = vpop.f32.mrb[7].mxu0  ;;  %v1731_v14 = vadd.f32 1.0, %v3372_v11  ;;  %3391 = vpow2.f32 %v2552_v6  ;;  %v2963_v63 = vpop.f32.mrb[55].mxu1  ;;  %v2796_v27 = vpack.c.bf16 %v1866_v16, %v1863_v12 }
 0x1e8   : > { %v3374_v25 = vpop.eup %3373  ;;  %3393 = vpow2.f32 %v2553_v13  ;;  %v4417_v28 = vadd.f32 %v2961_v19, %v4336_v32  ;;  %v2964_v30 = vadd.f32 %v2963_v63, %v2962_v22  ;;  %v2556_v46 = vmul.f32 -1.442695, %v4414_v24 }
 0x1e9   : > { %v3376_v17 = vpop.eup %3375  ;;  %3395 = vrcp.f32 %v1731_v14  ;;  %v1734_v3 = vadd.f32 1.0, %v3374_v25  ;;  %2842 = vst [vmem:[%s4395_s18 + $0x8] sm:$0xff] %v2796_v27  }
 0x1ea   : > { %v3378_v33 = vpop.eup %3377  ;;  %v1711_v34 = vadd.f32 1.0, %v3376_v17  ;;  %v2578_v37 = vmul.f32 -1.442695, %v4417_v28  ;;  %3397 = vpow2.f32 %v2555_v21  ;;  %v4422_v40 = vadd.f32 %v2964_v30, %v4338_v35 }
 0x1eb   : > { %v3380_v20 = vpop.eup %3379  ;;  %3399 = vrcp.f32 %v1734_v3  ;;  %v1712_v42 = vadd.f32 1.0, %v3378_v33  ;;  %v4424_v45 = vpop.f32.mrb[8].mxu0 }
 0x1ec   : > { %v3382_v32 = vpop.eup %3381  ;;  %3401 = vrcp.f32 %v1711_v34  ;;  %v2965_v23 = vpop.f32.mrb[56].mxu1  ;;  %v1869_v55 = vmul.f32 %v3380_v20, %v4358_v8  ;;  %v2581_v13 = vmul.f32 -1.442695, %v4422_v40  ;;  %v2558_v21 = vmul.f32 -1.442695, %v4424_v45 }
 0x1ed   : > { %v4427_v48 = vpop.f32.mrb[9].mxu0  ;;  %v3384_v50 = vpop.eup %3383  ;;  %3403 = vrcp.f32 %v1712_v42  ;;  %v1714_v51 = vadd.f32 1.0, %v3382_v32 }
 0x1ee   : > { %v2966_v52 = vpop.f32.mrb[57].mxu1  ;;  %v4429_v54 = vpop.f32.mrb[10].mxu0  ;;  %v1872_v58 = vmul.f32 %v3384_v50, %v4362_v18  ;;  %3405 = vpow2.f32 %v2578_v37  ;;  %v2559_v27 = vmul.f32 -1.442695, %v4427_v48 }
 0x1ef   : > { %v3386_v35 = vpop.eup %3385  ;;  %v2967_v59 = vadd.f32 %v2966_v52, %v2965_v23  ;;  %v2968_v53 = vpop.f32.mrb[58].mxu1  ;;  %3407 = vrcp.f32 %v1714_v51  ;;  %v2561_v51 = vmul.f32 -1.442695, %v4429_v54 }
 0x1f0   : > { %v4433_v60 = vpop.f32.mrb[11].mxu0  ;;  %v3388_v62 = vpop.eup %3387  ;;  %v1737_v56 = vadd.f32 1.0, %v3386_v35  ;;  %v2801_v4 = vpack.c.bf16 %v1872_v58, %v1869_v55  ;;  %3409 = vpow2.f32 %v2556_v46 }
 0x1f1   : > { %v2969_v0 = vpop.f32.mrb[59].mxu1  ;;  %v3390_v1 = vpop.eup %3389  ;;  %v1715_v26 = vadd.f32 1.0, %v3388_v62  ;;  %v4436_v6 = vadd.f32 %v2967_v59, %v4340_v38 }
 0x1f2   : > { %v3392_v8 = vpop.eup %3391  ;;  %3411 = vrcp.f32 %v1737_v56  ;;  %v1740_v18 = vadd.f32 1.0, %v3390_v1  ;;  %v2970_v7 = vadd.f32 %v2969_v0, %v2968_v53  ;;  %2843 = vst [vmem:[%s4395_s18 + $0x10] sm:$0xff] %v2801_v4   ;;  %v2562_v53 = vmul.f32 -1.442695, %v4433_v60 }
 0x1f3   : > { %v3394_v10 = vpop.eup %3393  ;;  %3413 = vrcp.f32 %v1715_v26  ;;  %v1717_v12 = vadd.f32 1.0, %v3392_v8  ;;  %v4443_v19 = vpop.f32.mrb[12].mxu0  ;;  %v2584_v30 = vmul.f32 -1.442695, %v4436_v6 }
 0x1f4   : > { %v3396_v29 = vpop.eup %3395  ;;  %3415 = vrcp.f32 %v1740_v18  ;;  %v1718_v11 = vadd.f32 1.0, %v3394_v10  ;;  %v4441_v16 = vadd.f32 %v2970_v7, %v4342_v41  ;;  %v2971_v22 = vpop.f32.mrb[60].mxu1 }
 0x1f5   : > { %v3398_v38 = vpop.eup %3397  ;;  %3417 = vrcp.f32 %v1717_v12  ;;  %v4446_v14 = vpop.f32.mrb[13].mxu0  ;;  %v1875_v41 = vmul.f32 %v3396_v29, %v4367_v31 }
 0x1f6   : > { %v3400_v63 = vpop.eup %3399  ;;  %3419 = vrcp.f32 %v1718_v11  ;;  %v1720_v25 = vadd.f32 1.0, %v3398_v38  ;;  %v2972_v17 = vpop.f32.mrb[61].mxu1  ;;  %v2587_v0 = vmul.f32 -1.442695, %v4441_v16  ;;  %v2565_v10 = vmul.f32 -1.442695, %v4446_v14 }
 0x1f7   : > { %v3402_v3 = vpop.eup %3401  ;;  %v1878_v33 = vmul.f32 %v3400_v63, %v4371_v36  ;;  %3421 = vpow2.f32 %v2581_v13  ;;  %v2973_v34 = vadd.f32 %v2972_v17, %v2971_v22  ;;  %v4452_v37 = vpop.f32.mrb[14].mxu0 }
 0x1f8   : > { %v2974_v20 = vpop.f32.mrb[62].mxu1  ;;  %v3404_v42 = vpop.eup %3403  ;;  %3423 = vrcp.f32 %v1720_v25  ;;  %v1855_v58 = vmul.f32 %v3402_v3, %v4377_v39  ;;  %v2564_v39 = vmul.f32 -1.442695, %v4443_v19 }
 0x1f9   : > { %v4454_v32 = vpop.f32.mrb[15].mxu0  ;;  %v2975_v46 = vpop.f32.mrb[63].mxu1  ;;  %v2806_v50 = vpack.c.bf16 %v1878_v33, %v1875_v41  ;;  %3425 = vpow2.f32 %v2558_v21  ;;  %v4458_v31 = vadd.f32 %v2973_v34, %v4344_v44  ;;  %v1856_v18 = vmul.f32 %v3404_v42, %v4381_v43 }
 0x1fa   : > { %v3406_v23 = vpop.eup %3405  ;;  %3427 = vpow2.f32 %v2559_v27  ;;  %v2976_v35 = vadd.f32 %v2975_v46, %v2974_v20  ;;  %v2568_v42 = vmul.f32 -1.442695, %v4454_v32 }
 0x1fb   : > { %v3408_v36 = vpop.eup %3407  ;;  %v1743_v52 = vadd.f32 1.0, %v3406_v23  ;;  %2844 = vst [vmem:[%s4395_s18 + $0x18] sm:$0xff] %v2806_v50   ;;  %3429 = vpow2.f32 %v2584_v30  ;;  %v4468_v1 = vpop.f32.mrb[16].mxu0  ;;  %v2590_v43 = vmul.f32 -1.442695, %v4458_v31 }
 0x1fc   : > { %v3410_v55 = vpop.eup %3409  ;;  %v1858_v59 = vmul.f32 %v3408_v36, %v4384_v49  ;;  %v4466_v44 = vadd.f32 %v2976_v35, %v4346_v47  ;;  %v4471_v49 = vpop.f32.mrb[17].mxu0 }
 0x1fd   : > { %v3412_v62 = vpop.eup %3411  ;;  %3431 = vrcp.f32 %v1743_v52  ;;  %v1721_v56 = vadd.f32 1.0, %v3410_v55  ;;  %v4476_v12 = vpop.f32.mrb[18].mxu0 }
 0x1fe   : > { %v3414_v4 = vpop.eup %3413  ;;  %v2711_v26 = vpack.c.bf16 %v1858_v59, %v1855_v58  ;;  %3433 = vpow2.f32 %v2561_v51  ;;  %v1881_v13 = vmul.f32 %v3412_v62, %v4391_v61  ;;  %v2567_v61 = vmul.f32 -1.442695, %v4452_v37 }
 0x1ff   : > { %v3416_v8 = vpop.eup %3415  ;;  %v1859_v7 = vmul.f32 %v3414_v4, %v4388_v57  ;;  %3435 = vrcp.f32 %v1721_v56  ;;  %v4485_v57 = vpop.f32.mrb[19].mxu0  ;;  %v2593_v51 = vmul.f32 -1.442695, %v4466_v44 }
 0x200   : > { %v3418_v47 = vpop.eup %3417  ;;  %2712 = vst [vmem:[%s4480_s21] sm:$0xff] %v2711_v26   ;;  %v1884_v29 = vmul.f32 %v3416_v8, %v4400_v2  ;;  %3437 = vpow2.f32 %v2562_v53 }
 0x201   : > { %v3420_v11 = vpop.eup %3419  ;;  %v2751_v38 = vpack.c.bf16 %v1859_v7, %v1856_v18  ;;  %3439 = vpow2.f32 %v2587_v0  ;;  %v1861_v27 = vmul.f32 %v3418_v47, %v4402_v5 }
 0x202   : > { %v3422_v21 = vpop.eup %3421  ;;  %v2811_v22 = vpack.c.bf16 %v1884_v29, %v1881_v13  ;;  %3441 = vpow2.f32 %v2564_v39  ;;  %v1862_v58 = vmul.f32 %v3420_v11, %v4406_v9  ;;  %v2570_v9 = vmul.f32 -1.442695, %v4468_v1 }
 0x203   : > { %v3424_v63 = vpop.eup %3423  ;;  %2752 = vst [vmem:[%s4489_s15] sm:$0xff] %v2751_v38   ;;  %v1746_v2 = vadd.f32 1.0, %v3422_v21  ;;  %3443 = vpow2.f32 %v2565_v10  ;;  %v4495_v41 = vpop.f32.mrb[20].mxu0  ;;  %v2571_v38 = vmul.f32 -1.442695, %v4471_v49 }
 0x204   : > { %v3426_v25 = vpop.eup %3425  ;;  %2845 = vst [vmem:[%s4395_s18 + $0x20] sm:$0xff] %v2811_v22   ;;  %v1864_v30 = vmul.f32 %v3424_v63, %v4410_v15  ;;  %3445 = vpow2.f32 %v2590_v43  ;;  %v4498_v46 = vpop.f32.mrb[21].mxu0  ;;  %v2573_v63 = vmul.f32 -1.442695, %v4476_v12 }
 0x205   : > { %v3428_v17 = vpop.eup %3427  ;;  %3447 = vrcp.f32 %v1746_v2  ;;  %v1723_v3 = vadd.f32 1.0, %v3426_v25  ;;  %v4500_v50 = vpop.f32.mrb[22].mxu0 }
 0x206   : > { %v3430_v33 = vpop.eup %3429  ;;  %v2716_v34 = vpack.c.bf16 %v1864_v30, %v1861_v27  ;;  %v1724_v20 = vadd.f32 1.0, %v3428_v17  ;;  %3449 = vpow2.f32 %v2567_v61  ;;  %v4504_v36 = vpop.f32.mrb[23].mxu0  ;;  %v2574_v27 = vmul.f32 -1.442695, %v4485_v57 }
 0x207   : > { %v3432_v23 = vpop.eup %3431  ;;  %3451 = vrcp.f32 %v1723_v3  ;;  %v1749_v5 = vadd.f32 1.0, %v3430_v33 }
 0x208   : > { %v3434_v15 = vpop.eup %3433  ;;  %2828 = vst [vmem:[%s4480_s21 + $0x8] sm:$0xff] %v2716_v34   ;;  %3453 = vrcp.f32 %v1724_v20  ;;  %v1887_v43 = vmul.f32 %v3432_v23, %v4417_v28  ;;  %v2577_v23 = vmul.f32 -1.442695, %v4498_v46 }
 0x209   : > { %v3436_v52 = vpop.eup %3435  ;;  %3455 = vrcp.f32 %v1749_v5  ;;  %v1726_v35 = vadd.f32 1.0, %v3434_v15 }
 0x20a   : > { %v3438_v55 = vpop.eup %3437  ;;  %v1865_v59 = vmul.f32 %v3436_v52, %v4414_v24  ;;  %3457 = vpow2.f32 %v2568_v42  ;;  %v2579_v52 = vmul.f32 -1.442695, %v4500_v50 }
 0x20b   : > { %v3440_v53 = vpop.eup %3439  ;;  %3459 = vrcp.f32 %v1726_v35  ;;  %v1727_v62 = vadd.f32 1.0, %v3438_v55  ;;  %v4508_v8 = vpop.f32.mrb[24].mxu0  ;;  %v2580_v35 = vmul.f32 -1.442695, %v4504_v36 }
 0x20c   : > { %v3442_v56 = vpop.eup %3441  ;;  %v2756_v0 = vpack.c.bf16 %v1865_v59, %v1862_v58  ;;  %v1752_v4 = vadd.f32 1.0, %v3440_v53  ;;  %3461 = vpow2.f32 %v2593_v51  ;;  %v4512_v24 = vpop.f32.mrb[25].mxu0 }
 0x20d   : > { %v3444_v26 = vpop.eup %3443  ;;  %3463 = vrcp.f32 %v1727_v62  ;;  %v1729_v39 = vadd.f32 1.0, %v3442_v56  ;;  %v4514_v13 = vpop.f32.mrb[26].mxu0 }
 0x20e   : > { %v3446_v18 = vpop.eup %3445  ;;  %2835 = vst [vmem:[%s4489_s15 + $0x8] sm:$0xff] %v2756_v0   ;;  %3465 = vrcp.f32 %v1752_v4  ;;  %v1730_v7 = vadd.f32 1.0, %v3444_v26  ;;  %v4519_v21 = vpop.f32.mrb[27].mxu0  ;;  %v2582_v4 = vmul.f32 -1.442695, %v4508_v8 }
 0x20f   : > { %v3448_v10 = vpop.eup %3447  ;;  %3467 = vrcp.f32 %v1729_v39  ;;  %v1755_v47 = vadd.f32 1.0, %v3446_v18 }
 0x210   : > { %v3450_v29 = vpop.eup %3449  ;;  %v1890_v11 = vmul.f32 %v3448_v10, %v4422_v40  ;;  %3469 = vrcp.f32 %v1730_v7  ;;  %v2576_v40 = vmul.f32 -1.442695, %v4495_v41 }
 0x211   : > { %v3452_v22 = vpop.eup %3451  ;;  %3471 = vrcp.f32 %v1755_v47  ;;  %v1732_v61 = vadd.f32 1.0, %v3450_v29 }
 0x212   : > { %v3454_v2 = vpop.eup %3453  ;;  %v2816_v25 = vpack.c.bf16 %v1890_v11, %v1887_v43  ;;  %3473 = vpow2.f32 %v2570_v9  ;;  %v1867_v20 = vmul.f32 %v3452_v22, %v4424_v45 }
 0x213   : > { %v3456_v30 = vpop.eup %3455  ;;  %3475 = vrcp.f32 %v1732_v61  ;;  %v4525_v33 = vpop.f32.mrb[28].mxu0  ;;  %v1868_v45 = vmul.f32 %v3454_v2, %v4427_v48  ;;  %v2583_v48 = vmul.f32 -1.442695, %v4512_v24 }
 0x214   : > { %v3458_v28 = vpop.eup %3457  ;;  %2846 = vst [vmem:[%s4395_s18 + $0x28] sm:$0xff] %v2816_v25   ;;  %3477 = vpow2.f32 %v2571_v38  ;;  %v4530_v5 = vpop.f32.mrb[29].mxu0  ;;  %v1893_v56 = vmul.f32 %v3456_v30, %v4436_v6  ;;  %v2585_v6 = vmul.f32 -1.442695, %v4514_v13 }
 0x215   : > { %v3460_v17 = vpop.eup %3459  ;;  %v1733_v3 = vadd.f32 1.0, %v3458_v28  ;;  %3479 = vpow2.f32 %v2573_v63  ;;  %v4534_v55 = vpop.f32.mrb[30].mxu0  ;;  %v2586_v63 = vmul.f32 -1.442695, %v4519_v21 }
 0x216   : > { %v3462_v34 = vpop.eup %3461  ;;  %v1870_v42 = vmul.f32 %v3460_v17, %v4429_v54  ;;  %3481 = vpow2.f32 %v2574_v27  ;;  %v4538_v53 = vpop.f32.mrb[31].mxu0 }
 0x217   : > { %v3464_v15 = vpop.eup %3463  ;;  %3483 = vrcp.f32 %v1733_v3  ;;  %v1758_v51 = vadd.f32 1.0, %v3462_v34 }
 0x218   : > { %v3466_v58 = vpop.eup %3465  ;;  %v2721_v59 = vpack.c.bf16 %v1870_v42, %v1867_v20  ;;  %v1871_v54 = vmul.f32 %v3464_v15, %v4433_v60  ;;  %3485 = vpow2.f32 %v2576_v40 }
 0x219   : > { %v3468_v62 = vpop.eup %3467  ;;  %v1896_v0 = vmul.f32 %v3466_v58, %v4441_v16  ;;  %3487 = vrcp.f32 %v1758_v51  ;;  %v2589_v58 = vmul.f32 -1.442695, %v4530_v5 }
 0x21a   : > { %v3470_v26 = vpop.eup %3469  ;;  %2829 = vst [vmem:[%s4480_s21 + $0x10] sm:$0xff] %v2721_v59   ;;  %v2761_v39 = vpack.c.bf16 %v1871_v54, %v1868_v45  ;;  %3489 = vpow2.f32 %v2577_v23  ;;  %v1873_v47 = vmul.f32 %v3468_v62, %v4443_v19  ;;  %v2591_v54 = vmul.f32 -1.442695, %v4534_v55 }
 0x21b   : > { %v3472_v60 = vpop.eup %3471  ;;  %v2821_v18 = vpack.c.bf16 %v1896_v0, %v1893_v56  ;;  %3491 = vpow2.f32 %v2579_v52  ;;  %v1874_v30 = vmul.f32 %v3470_v26, %v4446_v14  ;;  %v2592_v0 = vmul.f32 -1.442695, %v4538_v53 }
 0x21c   : > { %v3474_v7 = vpop.eup %3473  ;;  %2836 = vst [vmem:[%s4489_s15 + $0x10] sm:$0xff] %v2761_v39   ;;  %3493 = vpow2.f32 %v2580_v35  ;;  %v1899_v3 = vmul.f32 %v3472_v60, %v4458_v31 }
 0x21d   : > { %v3476_v9 = vpop.eup %3475  ;;  %2847 = vst [vmem:[%s4395_s18 + $0x30] sm:$0xff] %v2821_v18   ;;  %v1735_v16 = vadd.f32 1.0, %v3474_v7  ;;  %3495 = vpow2.f32 %v2582_v4 }
 0x21e   : > { %v3478_v10 = vpop.eup %3477  ;;  %v1876_v29 = vmul.f32 %v3476_v9, %v4452_v37  ;;  %3497 = vpow2.f32 %v2583_v48  ;;  %v2588_v37 = vmul.f32 -1.442695, %v4525_v33 }
 0x21f   : > { %v3480_v43 = vpop.eup %3479  ;;  %3499 = vrcp.f32 %v1735_v16  ;;  %v1736_v11 = vadd.f32 1.0, %v3478_v10 }
 0x220   : > { %v3482_v38 = vpop.eup %3481  ;;  %v2726_v22 = vpack.c.bf16 %v1876_v29, %v1873_v47  ;;  %v1738_v61 = vadd.f32 1.0, %v3480_v43  ;;  %3501 = vpow2.f32 %v2585_v6 }
 0x221   : > { %v3484_v2 = vpop.eup %3483  ;;  %3503 = vrcp.f32 %v1736_v11  ;;  %v1739_v25 = vadd.f32 1.0, %v3482_v38 }
 0x222   : > { %v3486_v27 = vpop.eup %3485  ;;  %2830 = vst [vmem:[%s4480_s21 + $0x18] sm:$0xff] %v2726_v22   ;;  %v1877_v19 = vmul.f32 %v3484_v2, %v4454_v32  ;;  %3505 = vrcp.f32 %v1738_v61 }
 0x223   : > { %v3488_v28 = vpop.eup %3487  ;;  %3507 = vrcp.f32 %v1739_v25  ;;  %v1741_v40 = vadd.f32 1.0, %v3486_v27 }
 0x224   : > { %v3490_v17 = vpop.eup %3489  ;;  %v2766_v34 = vpack.c.bf16 %v1877_v19, %v1874_v30  ;;  %v1902_v20 = vmul.f32 %v3488_v28, %v4466_v44  ;;  %3509 = vpow2.f32 %v2586_v63 }
 0x225   : > { %v3492_v42 = vpop.eup %3491  ;;  %3511 = vrcp.f32 %v1741_v40  ;;  %v1742_v14 = vadd.f32 1.0, %v3490_v17 }
 0x226   : > { %v3494_v23 = vpop.eup %3493  ;;  %2837 = vst [vmem:[%s4489_s15 + $0x18] sm:$0xff] %v2766_v34   ;;  %v2826_v32 = vpack.c.bf16 %v1902_v20, %v1899_v3  ;;  %v1744_v15 = vadd.f32 1.0, %v3492_v42  ;;  %3513 = vpow2.f32 %v2588_v37 }
 0x227   : > { %v3496_v51 = vpop.eup %3495  ;;  %3515 = vrcp.f32 %v1742_v14  ;;  %v1745_v52 = vadd.f32 1.0, %v3494_v23 }
 0x228   : > { %v3498_v35 = vpop.eup %3497  ;;  %2848 = vst [vmem:[%s4395_s18 + $0x38] sm:$0xff] %v2826_v32   ;;  %3517 = vrcp.f32 %v1744_v15  ;;  %v1747_v31 = vadd.f32 1.0, %v3496_v51  ;;  %s4828_s18 = sld [smem:[#allocation32_spill]] }
 0x229   : > { %v3500_v45 = vpop.eup %3499  ;;  %3519 = vrcp.f32 %v1745_v52  ;;  %v1748_v44 = vadd.f32 1.0, %v3498_v35 }
 0x22a   : > { %v3502_v59 = vpop.eup %3501  ;;  %3521 = vrcp.f32 %v1747_v31  ;;  %v1879_v39 = vmul.f32 %v3500_v45, %v4468_v1 }
 0x22b   : > { %v3504_v62 = vpop.eup %3503  ;;  %3523 = vrcp.f32 %v1748_v44  ;;  %v1750_v56 = vadd.f32 1.0, %v3502_v59 }
 0x22c   : > { %v3506_v4 = vpop.eup %3505  ;;  %3525 = vpow2.f32 %v2589_v58  ;;  %v1880_v18 = vmul.f32 %v3504_v62, %v4471_v49 }
 0x22d   : > { %v3508_v26 = vpop.eup %3507  ;;  %v1882_v48 = vmul.f32 %v3506_v4, %v4476_v12  ;;  %3527 = vrcp.f32 %v1750_v56 }
 0x22e   : > { %v3510_v60 = vpop.eup %3509  ;;  %v1883_v7 = vmul.f32 %v3508_v26, %v4485_v57  ;;  %3529 = vpow2.f32 %v2591_v54  ;;  %s4829_s10 = smov %s4828_s18  ;;  %s4611_s1 = scalar_lea.hbm %s4828_s18, %s2648_s26 }
 0x22f   : > { %v3512_v6 = vpop.eup %3511  ;;  %v2731_v9 = vpack.c.bf16 %v1882_v48, %v1879_v39  ;;  %v1751_v16 = vadd.f32 1.0, %v3510_v60  ;;  %3531 = vpow2.f32 %v2592_v0 }
 0x230   : > { %v3514_v10 = vpop.eup %3513  ;;  %v2771_v47 = vpack.c.bf16 %v1883_v7, %v1880_v18  ;;  %v1885_v43 = vmul.f32 %v3512_v6, %v4495_v41 }
 0x231   : > { %v3516_v29 = vpop.eup %3515  ;;  %2831 = vst [vmem:[%s4480_s21 + $0x20] sm:$0xff] %v2731_v9   ;;  %3533 = vrcp.f32 %v1751_v16  ;;  %v1753_v63 = vadd.f32 1.0, %v3514_v10 }
 0x232   : > { %v3518_v1 = vpop.eup %3517  ;;  %2838 = vst [vmem:[%s4489_s15 + $0x20] sm:$0xff] %v2771_v47   ;;  %v1886_v11 = vmul.f32 %v3516_v29, %v4498_v46 }
 0x233   : > { %v3520_v12 = vpop.eup %3519  ;;  %v1888_v49 = vmul.f32 %v3518_v1, %v4500_v50  ;;  %3535 = vrcp.f32 %v1753_v63 }
 0x234   : > { %v3522_v57 = vpop.eup %3521  ;;  %v1889_v38 = vmul.f32 %v3520_v12, %v4504_v36 }
 0x235   : > { %v3524_v22 = vpop.eup %3523  ;;  %v2736_v61 = vpack.c.bf16 %v1888_v49, %v1885_v43  ;;  %v1891_v41 = vmul.f32 %v3522_v57, %v4508_v8 }
 0x236   : > { %v3526_v2 = vpop.eup %3525  ;;  %v2776_v25 = vpack.c.bf16 %v1889_v38, %v1886_v11  ;;  %v1892_v17 = vmul.f32 %v3524_v22, %v4512_v24 }
 0x237   : > { %v3528_v27 = vpop.eup %3527  ;;  %2832 = vst [vmem:[%s4480_s21 + $0x28] sm:$0xff] %v2736_v61   ;;  %v1754_v30 = vadd.f32 1.0, %v3526_v2 }
 0x238   : > { %v3530_v19 = vpop.eup %3529  ;;  %2839 = vst [vmem:[%s4489_s15 + $0x28] sm:$0xff] %v2776_v25   ;;  %v1894_v50 = vmul.f32 %v3528_v27, %v4514_v13 }
 0x239   : > { %v3532_v46 = vpop.eup %3531  ;;  %v1756_v36 = vadd.f32 1.0, %v3530_v19  ;;  %3537 = vrcp.f32 %v1754_v30 }
 0x23a   : > { %v2741_v37 = vpack.c.bf16 %v1894_v50, %v1891_v41  ;;  %v1757_v28 = vadd.f32 1.0, %v3532_v46 }
 0x23b   : > { %v3534_v40 = vpop.eup %3533  ;;  %3539 = vrcp.f32 %v1756_v36 }
 0x23c   : > { %2833 = vst [vmem:[%s4480_s21 + $0x30] sm:$0xff] %v2741_v37   ;;  %v1895_v8 = vmul.f32 %v3534_v40, %v4519_v21  ;;  %3541 = vrcp.f32 %v1757_v28 }
 0x23d   : > { %v3536_v3 = vpop.eup %3535 }
 0x23e   : > { %v2781_v13 = vpack.c.bf16 %v1895_v8, %v1892_v17  ;;  %v1897_v21 = vmul.f32 %v3536_v3, %v4525_v33 }
 0x240   : > { %2840 = vst [vmem:[%s4489_s15 + $0x30] sm:$0xff] %v2781_v13  }
 0x243   : > { %v3538_v34 = vpop.eup %3537 }
 0x244   : > { %v1898_v14 = vmul.f32 %v3538_v34, %v4530_v5 }
 0x245   : > { %v3540_v20 = vpop.eup %3539 }
 0x246   : > { %v3542_v24 = vpop.eup %3541  ;;  %v1900_v42 = vmul.f32 %v3540_v20, %v4534_v55 }
 0x247   : > { %v1901_v23 = vmul.f32 %v3542_v24, %v4538_v53 }
 0x248   : > { %v2746_v32 = vpack.c.bf16 %v1900_v42, %v1897_v21 }
 0x249   : > { %v2786_v15 = vpack.c.bf16 %v1901_v23, %v1898_v14 }
 0x24a   : > { %2834 = vst [vmem:[%s4480_s21 + $0x38] sm:$0xff] %v2746_v32  }
 0x24b   : > { %2841 = vst [vmem:[%s4489_s15 + $0x38] sm:$0xff] %v2786_v15  }
 0x24c   : > { %3616 = shalt.err (!%p3613_p4)
}
 0x24d   : > { %s3617_s29 = scalar_lea.hbm %s4594_s14, 1024  ;;  %s3621_s2 = scalar_lea.hbm %s4826_s13, 16384 }
 0x24e   : > { %p3618_p7 = scmp.ne.s32.totalorder %s4594_s14, %s3617_s29  ;;  %p3622_p9 = scmp.lt.u32.totalorder %s4594_s14, %s4826_s13 }
 0x24f   : > { %p3623_p6 = scmp.lt.u32.totalorder %s3621_s2, %s3617_s29  ;;  %p3625_p0 = scmp.lt.u32.totalorder %s3617_s29, %s4594_s14 }
 0x250   : > { %p3619_p8 = pnand %p3618_p7, %p4831_p3 }
 0x251   : > { %p3624_p5 = por %p3623_p6, %p3622_p9 }
 0x252   : > { %p3620_p12 = pneg %p3619_p8 }
 0x253   : > { %p3626_p13 = por %p3625_p0, %p3624_p5 }
 0x255   : > { %p3627_p2 = pnand %p3626_p13, %p3620_p12 }
 0x257   : > { %3630 = shalt.err (!%p3627_p2)
}
 0x258   : > { %s3838_s23 = smov 64   ;;  %s3839_s5 = smov 4  }
 0x259   : > { %3016 = dma.vmem_to_hbm [thread:$0]  (%p4831_p3), %s4596_s4, 1024, %s4594_s14, %s4616_s27, %s3838_s23, %s3838_s23, %s3839_s5  }
 0x25a   : > { %s4832_s18 = sand.u32 1, %s4824_s8   ;;  %s3631_s28 = scalar_lea.vmem %s4603_s24, 1024 }
 0x25b   : > { %s4645_s0 = scalar_lea.sflag [#allocation9], %s4832_s18  ;;  %p3632_p1 = scmp.ne.s32.totalorder %s4603_s24, %s3631_s28 }
 0x25c   : > { %s3840_s29 = smov [#allocation8]  }
 0x25d   : > { %p3633_p10 = pnand %p3632_p1, %p4831_p3  ;;  %s3635_s21 = sshll.u32 %s3840_s29, 4  ;;  %s3636_s21 = int_to_ptr.vmem [resolvable:$false] %s3635_s21 }
 0x25e   : > { %s3637_s15 = scalar_lea.vmem %s3636_s21, 2048  ;;  %p3638_p4 = scmp.lt.s32.totalorder %s4603_s24, %s3636_s21 }
 0x25f   : > { %p3634_p11 = pneg %p3633_p10  ;;  %p3639_p7 = scmp.lt.s32.totalorder %s3637_s15, %s3631_s28 }
 0x261   : > { %p3640_p8 = por %p3639_p7, %p3638_p4 }
 0x263   : > { %p3641_p12 = pnand %p3640_p8, %p3634_p11 }
 0x265   : > { %3644 = shalt.err (!%p3641_p12)
}
 0x266   : > { %s3645_s27 = scalar_lea.hbm %s4601_s7, 1024  ;;  %s3649_s14 = scalar_lea.hbm %s4827_s12, 16384 }
 0x267   : > { %p3646_p9 = scmp.ne.s32.totalorder %s4601_s7, %s3645_s27  ;;  %p3650_p0 = scmp.lt.u32.totalorder %s4601_s7, %s4827_s12 }
 0x268   : > { %p3651_p13 = scmp.lt.u32.totalorder %s3649_s14, %s3645_s27  ;;  %p3653_p1 = scmp.lt.u32.totalorder %s3645_s27, %s4601_s7 }
 0x269   : > { %p3647_p6 = pnand %p3646_p9, %p4831_p3 }
 0x26a   : > { %p3652_p2 = por %p3651_p13, %p3650_p0 }
 0x26b   : > { %p3648_p5 = pneg %p3647_p6 }
 0x26c   : > { %p3654_p10 = por %p3653_p1, %p3652_p2 }
 0x26e   : > { %p3655_p11 = pnand %p3654_p10, %p3648_p5 }
 0x270   : > { %3658 = shalt.err (!%p3655_p11)
}
 0x271   : > { %3017 = dma.vmem_to_hbm [thread:$0]  (%p4831_p3), %s4603_s24, 1024, %s4601_s7, %s4645_s0, %s3838_s23, %s3838_s23, %s3839_s5  }
 0x272   : > { %s3659_s3 = scalar_lea.vmem %s4605_s6, 1024  ;;  %s3841_s18 = smov [#allocation10]  }
 0x273   : > { %p3660_p4 = scmp.ne.s32.totalorder %s4605_s6, %s3659_s3  ;;  %s3663_s28 = sshll.u32 %s3841_s18, 4  ;;  %s3664_s28 = int_to_ptr.vmem [resolvable:$false] %s3663_s28 }
 0x274   : > { %s3665_s29 = scalar_lea.vmem %s3664_s28, 2048  ;;  %p3666_p12 = scmp.lt.s32.totalorder %s4605_s6, %s3664_s28 }
 0x275   : > { %p3661_p7 = pnand %p3660_p4, %p4831_p3  ;;  %p3667_p9 = scmp.lt.s32.totalorder %s3665_s29, %s3659_s3 }
 0x277   : > { %p3662_p8 = pneg %p3661_p7  ;;  %p3668_p6 = por %p3667_p9, %p3666_p12 }
 0x279   : > { %p3669_p5 = pnand %p3668_p6, %p3662_p8 }
 0x27b   : > { %3672 = shalt.err (!%p3669_p5)
}
 0x27c   : > { %s3673_s24 = scalar_lea.hbm %s4611_s1, 1024  ;;  %s3677_s15 = scalar_lea.hbm %s4829_s10, 16384 }
 0x27d   : > { %p3674_p0 = scmp.ne.s32.totalorder %s4611_s1, %s3673_s24  ;;  %p3678_p1 = scmp.lt.u32.totalorder %s4611_s1, %s4829_s10 }
 0x27e   : > { %p3679_p10 = scmp.lt.u32.totalorder %s3677_s15, %s3673_s24  ;;  %p3681_p4 = scmp.lt.u32.totalorder %s3673_s24, %s4611_s1 }
 0x27f   : > { %p3675_p13 = pnand %p3674_p0, %p4831_p3 }
 0x280   : > { %p3680_p11 = por %p3679_p10, %p3678_p1 }
 0x281   : > { %p3676_p2 = pneg %p3675_p13 }
 0x282   : > { %p3682_p7 = por %p3681_p4, %p3680_p11 }
 0x284   : > { %p3683_p8 = pnand %p3682_p7, %p3676_p2 }
 0x286   : > { %3686 = shalt.err (!%p3683_p8)
}
 0x287   : > { %3018 = dma.vmem_to_hbm [thread:$0]  (%p4831_p3), %s4605_s6, 1024, %s4611_s1, %s4645_s0, %s3838_s23, %s3838_s23, %s3839_s5  }
 0x288 PF: > { %s4833_s4 = sld [smem:[#allocation15_spill]]  ;;  %p3040_p12 = scmp.ge.s32.totalorder %s3829_s30, 2 }
 0x289   : > { %p4834_p9 = scmp.ne.s32.totalorder %s4815_s9, 0 }
 0x28b   : > { %p3030_p6 = pnand %p3040_p12, %p4834_p9 }
 0x28e   : > { %s2226_s14 = sand.u32 1, %s4833_s4  }
 0x28f   : > { %s2227_s2 = scalar_lea.sflag [#allocation4], %s2226_s14 }
 0x290   : > { %3760 = dma.done.wait (!%p3030_p6), %s2227_s2, 1024  }
 0x291   : > { %3762 = vsyncadd (!%p3030_p6), %s2227_s2, 4294966272  ;;  %s4835_s25 = sadd.s32 4294967294, %s3829_s30  }
 0x292   : > { %s2235_s26 = sand.u32 1, %s4835_s25  }
 0x293   : > { %s2236_s3 = scalar_lea.sflag [#allocation9], %s2235_s26 }
 0x294   : > { %3764 = dma.done.wait (!%p3030_p6), %s2236_s3, 2048  }
 0x295   : > { %3766 = vsyncadd (!%p3030_p6), %s2236_s3, 4294965248  ;;  %s27_s30 = sadd.s32 1, %s3829_s30   ;;  %s4837_s9 = sld [smem:[#allocation25_spill]] }
 0x296   : > { %p4704_p3 = scmp.ge.s32.totalorder %s27_s30, 18   ;;  %s4838_s6 = sld [smem:[#allocation16_spill]] }
 0x297   : > { %s4839_s23 = sld [smem:[#allocation27_spill]]  ;;  %s4840_s24 = sld [smem:[#allocation18_spill]] }
 0x298   : > { %s4841_s25 = sld [smem:[#allocation19_spill]]  ;;  %s4842_s26 = sld [smem:[#allocation20_spill]] }
 0x299   : > { %s4843_s27 = sld [smem:[#allocation22_spill]]  ;;  %s4844_s28 = sld [smem:[#allocation23_spill]] }
 0x29a   : > { %s4845_s29 = sld [smem:[#allocation26_spill]]  ;;  %s4846_s15 = smov %s3773_s16 }
 0x29b   : > { %s4847_s16 = smov %s3777_s17  ;;  %s4848_s17 = smov %s4086_s11 }
 0x29c   : > { %s4849_s18 = smov %s3785_s19  ;;  %s4850_s19 = smov %s3789_s20 }
 0x29d   : > { %s4851_s20 = smov %s4837_s9  ;;  %s4852_s21 = smov %s3797_s22 }
 0x29e   : > { %s4853_s22 = smov %s4838_s6  ;;  %26 = sbr.rel (!%p4704_p3) target bundleno = 21 (0x15), region = 118 }
 0x2a5   :  { %2250 = vsyncpa [#allocation3], 1 }
 0x2a6   :  { %2252 = vsyncpa [#allocation3 + $0x1], 1 }
 0x2a7   :  { %2253 = vsyncpa [#allocation6], 1 }
 0x2a8   :  { %2255 = vsyncpa [#allocation6 + $0x1], 1 }
 0x2a9   :  { %2256 = vsyncpa [#allocation4], 1 }
 0x2aa   :  { %2258 = vsyncpa [#allocation4 + $0x1], 1 }
 0x2ab   :  { %2259 = vsyncpa [#allocation9], 1 }
 0x2ac   :  { %2261 = vsyncpa [#allocation9 + $0x1], 1 }

</bundles_post_ra>
